<compile_context>
chip_gen: v5e
topology: v5e:2x2
jax: 0.10.0
libtpu: 0.0.40
codegen_flags: <defaults>
</compile_context>

<pallas_src>
import jax
import jax.numpy as jnp
from jax import lax
from jax.experimental import pallas as pl
from jax.experimental.pallas import tpu as pltpu

C_PAD = 128  # lane-dense output-channel / feature padding (out_spec stays 128-wide)


def _round_up(x, m):
    return ((x + m - 1) // m) * m


def _tile_m(m, max_tm=512):
    """Pick (Mp, tm, nm) for the row dimension.

    Prefers tiles that are multiples of 8 and divide M exactly (no padding
    copy); small M becomes a single full-dim block (legal even when not a
    multiple of 8, but we round to 8 for clean sublane packing -- at most 7
    padded rows). Padding up to max_tm multiples is only a last-resort
    fallback."""
    mp = _round_up(max(m, 1), 8)
    if mp <= max_tm:
        return mp, mp, 1
    for tm in range(max_tm - max_tm % 8, 127, -8):
        if mp % tm == 0:
            return mp, tm, mp // tm
    mp = _round_up(m, max_tm)
    return mp, max_tm, mp // max_tm


def _compiler_params():
    return pltpu.CompilerParams(dimension_semantics=("parallel",))


# ---------------------------------------------------------------------------
# Kernel 1: fused conv (4 pooling-tap matmuls) + 2x2 maxpool + bias + ReLU
# ---------------------------------------------------------------------------
def _conv_relu_pool_kernel(p00_ref, p01_ref, p10_ref, p11_ref, w_ref, b_ref, o_ref):
    w = w_ref[...]

    def tap(p_ref):
        return jnp.dot(p_ref[...], w, preferred_element_type=jnp.float32)

    # max over the raw f32 accumulators FIRST, then one bias add + one ReLU
    # (relu(x + b) is monotone in x, so this equals per-tap bias+ReLU+max).
    m = jnp.maximum(jnp.maximum(tap(p00_ref), tap(p01_ref)),
                    jnp.maximum(tap(p10_ref), tap(p11_ref)))
    o_ref[...] = jnp.maximum(m + b_ref[...], 0.0).astype(o_ref.dtype)


def pallas_conv_relu_pool(p00, p01, p10, p11, w, b):
    """p_dd: (M, K) bf16 pooling-tap patch matrices; w: (K, 128) bf16; b: (1, 128) f32."""
    M, K = p00.shape
    assert w.shape == (K, C_PAD) and b.shape == (1, C_PAD)
    Mp, tm, nm = _tile_m(M)
    taps = (p00, p01, p10, p11)
    if Mp != M:
        taps = tuple(jnp.pad(p, ((0, Mp - M), (0, 0))) for p in taps)
    out = pl.pallas_call(
        _conv_relu_pool_kernel,
        grid=(nm,),
        in_specs=[pl.BlockSpec((tm, K), lambda i: (i, 0))] * 4
        + [
            pl.BlockSpec((K, C_PAD), lambda i: (0, 0)),
            pl.BlockSpec((1, C_PAD), lambda i: (0, 0)),
        ],
        out_specs=pl.BlockSpec((tm, C_PAD), lambda i: (i, 0)),
        out_shape=jax.ShapeDtypeStruct((Mp, C_PAD), jnp.bfloat16),
        compiler_params=_compiler_params(),
    )(*taps, w, b)
    return out[:M] if Mp != M else out


# ---------------------------------------------------------------------------
# Kernel 2: fused fc1 -> ReLU -> fc2 -> ReLU -> fc3 (intermediates stay in VMEM)
# ---------------------------------------------------------------------------
def _mlp_kernel(x_ref, w1_ref, b1_ref, w2_ref, b2_ref, w3_ref, b3_ref, o_ref):
    h = jnp.dot(x_ref[...], w1_ref[...], preferred_element_type=jnp.float32)
    h = jnp.maximum(h + b1_ref[...], 0.0).astype(w2_ref.dtype)
    h = jnp.dot(h, w2_ref[...], preferred_element_type=jnp.float32)
    h = jnp.maximum(h + b2_ref[...], 0.0).astype(w3_ref.dtype)
    h = jnp.dot(h, w3_ref[...], preferred_element_type=jnp.float32)
    o_ref[...] = (h + b3_ref[...]).astype(o_ref.dtype)


def pallas_mlp(x, w1, b1, w2, b2, w3, b3):
    M, K = x.shape                      # K = 400 (real fc1 inputs, no channel padding)
    Mp, tm, nm = _tile_m(M)
    xp = jnp.pad(x, ((0, Mp - M), (0, 0))) if Mp != M else x
    out = pl.pallas_call(
        _mlp_kernel,
        grid=(nm,),
        in_specs=[
            pl.BlockSpec((tm, K), lambda i: (i, 0)),
            pl.BlockSpec(w1.shape, lambda i: (0, 0)),
            pl.BlockSpec((1, C_PAD), lambda i: (0, 0)),
            pl.BlockSpec(w2.shape, lambda i: (0, 0)),
            pl.BlockSpec((1, C_PAD), lambda i: (0, 0)),
            pl.BlockSpec(w3.shape, lambda i: (0, 0)),
            pl.BlockSpec((1, C_PAD), lambda i: (0, 0)),
        ],
        out_specs=pl.BlockSpec((tm, C_PAD), lambda i: (i, 0)),
        out_shape=jax.ShapeDtypeStruct((Mp, C_PAD), jnp.float32),
        compiler_params=_compiler_params(),
    )(xp, w1, b1, w2, b2, w3, b3)
    return out[:M] if Mp != M else out


# ---------------------------------------------------------------------------
# im2col for the fused conv+pool kernel (NHWC, (kh, kw, c_real) column order)
# Only the REAL channels are gathered -> slim K (75 for conv1, 150 for conv2).
# ---------------------------------------------------------------------------
def _pool_tap_patches(x_nhwc, c_real, k, dy, dx):
    """Patch matrix for pooling tap (dy, dx): row (n, ph, pw) is the k*k*c_real patch
    whose conv output lands at pre-pool position (2*ph+dy, 2*pw+dx)."""
    N, H, W, _ = x_nhwc.shape
    Ho, Wo = H - k + 1, W - k + 1
    Hp, Wp = Ho // 2, Wo // 2
    x = x_nhwc[..., :c_real]
    cols = [
        x[:, dy + i: dy + i + 2 * Hp: 2, dx + j: dx + j + 2 * Wp: 2, :]
        for i in range(k)
        for j in range(k)
    ]
    return jnp.concatenate(cols, axis=-1).reshape(N * Hp * Wp, k * k * c_real)


def conv_relu_pool_layer(x_nhwc, w_prep, b_prep, c_real, k=5):
    N, H, W, _ = x_nhwc.shape
    Ho, Wo = H - k + 1, W - k + 1
    assert Ho % 2 == 0 and Wo % 2 == 0, "MaxPool2d(2,2) expects even conv output dims"
    Hp, Wp = Ho // 2, Wo // 2
    taps = [_pool_tap_patches(x_nhwc, c_real, k, dy, dx) for dy in (0, 1) for dx in (0, 1)]
    out = pallas_conv_relu_pool(*taps, w_prep, b_prep)        # (N*Hp*Wp, 128) bf16
    return out.reshape(N, Hp, Wp, C_PAD)


# ---------------------------------------------------------------------------
# Parameters: PyTorch-layout init + one-time kernel-layout preparation
# ---------------------------------------------------------------------------
def init_torch_params(key):
    """Random params in PyTorch layouts (what a state_dict would hold)."""
    ks = jax.random.split(key, 10)

    def u(k, shape, fan_in):
        bound = 1.0 / (fan_in ** 0.5)
        return jax.random.uniform(k, shape, jnp.float32, -bound, bound)

    return {
        "conv1_w": u(ks[0], (6, 3, 5, 5), 3 * 25),
        "conv1_b": u(ks[1], (6,), 3 * 25),
        "conv2_w": u(ks[2], (16, 6, 5, 5), 6 * 25),
        "conv2_b": u(ks[3], (16,), 6 * 25),
        "fc1_w": u(ks[4], (120, 400), 400),     # torch Linear layout (out, in)
        "fc1_b": u(ks[5], (120,), 400),
        "fc2_w": u(ks[6], (84, 120), 120),
        "fc2_b": u(ks[7], (84,), 120),
        "fc3_w": u(ks[8], (10, 84), 84),
        "fc3_b": u(ks[9], (10,), 84),
    }


def prepare_params(p, dtype=jnp.bfloat16):
    """One-time conversion to slim-K, lane-dense, kernel-friendly layouts."""

    def pad_bias(b):
        return jnp.pad(b, (0, C_PAD - b.shape[0])).reshape(1, C_PAD).astype(jnp.float32)

    # conv1: patch columns (kh, kw, cin=3) -> K = 75 exactly; out 6 -> 128 lanes.
    w1 = jnp.transpose(p["conv1_w"], (2, 3, 1, 0)).reshape(75, 6)
    w1 = jnp.pad(w1, ((0, 0), (0, C_PAD - 6)))

    # conv2: patch columns (kh, kw, cin=6) from the REAL channels -> K = 150.
    w2 = jnp.transpose(p["conv2_w"], (2, 3, 1, 0)).reshape(150, 16)
    w2 = jnp.pad(w2, ((0, 0), (0, C_PAD - 16)))

    # fc1: torch flattens NCHW (c, h, w); the kernel flattens NHWC real channels
    # (h, w, c) -> permute the 400 input-feature rows accordingly; out 120 -> 128.
    f1 = jnp.transpose(p["fc1_w"].reshape(120, 16, 5, 5), (2, 3, 1, 0)).reshape(400, 120)
    f1 = jnp.pad(f1, ((0, 0), (0, C_PAD - 120)))

    f2 = jnp.pad(p["fc2_w"].T, ((0, C_PAD - 120), (0, C_PAD - 84)))
    f3 = jnp.pad(p["fc3_w"].T, ((0, C_PAD - 84), (0, C_PAD - 10)))

    return {
        "conv1_w": w1.astype(dtype), "conv1_b": pad_bias(p["conv1_b"]),
        "conv2_w": w2.astype(dtype), "conv2_b": pad_bias(p["conv2_b"]),
        "fc1_w": f1.astype(dtype), "fc1_b": pad_bias(p["fc1_b"]),
        "fc2_w": f2.astype(dtype), "fc2_b": pad_bias(p["fc2_b"]),
        "fc3_w": f3.astype(dtype), "fc3_b": pad_bias(p["fc3_b"]),
    }


# ---------------------------------------------------------------------------
# Forward pass (matches TheModelClass.forward)
# ---------------------------------------------------------------------------
@jax.jit
def the_model_forward(x_nchw, kp):
    N = x_nchw.shape[0]
    x = jnp.transpose(x_nchw, (0, 2, 3, 1)).astype(jnp.bfloat16)        # NHWC bf16, C=3
    h = conv_relu_pool_layer(x, kp["conv1_w"], kp["conv1_b"], c_real=3)  # (N,14,14,128)
    h = conv_relu_pool_layer(h, kp["conv2_w"], kp["conv2_b"], c_real=6)  # (N, 5, 5,128)
    h = h[..., :16].reshape(N, 400)                  # real channels only -> slim fc1 K
    logits = pallas_mlp(
        h, kp["fc1_w"], kp["fc1_b"], kp["fc2_w"], kp["fc2_b"], kp["fc3_w"], kp["fc3_b"]
    )
    return logits[:, :10]


# ---------------------------------------------------------------------------
# Pure-JAX f32 reference (PyTorch semantics) for a tolerance check
# ---------------------------------------------------------------------------
@jax.jit
def reference_forward(x, p):
    dn1 = lax.conv_dimension_numbers(x.shape, p["conv1_w"].shape, ("NCHW", "OIHW", "NCHW"))
    h = lax.conv_general_dilated(x, p["conv1_w"], (1, 1), "VALID", dimension_numbers=dn1)
    h = jnp.maximum(h + p["conv1_b"][None, :, None, None], 0.0)
    h = lax.reduce_window(h, -jnp.inf, lax.max, (1, 1, 2, 2), (1, 1, 2, 2), "VALID")
    dn2 = lax.conv_dimension_numbers(h.shape, p["conv2_w"].shape, ("NCHW", "OIHW", "NCHW"))
    h = lax.conv_general_dilated(h, p["conv2_w"], (1, 1), "VALID", dimension_numbers=dn2)
    h = jnp.maximum(h + p["conv2_b"][None, :, None, None], 0.0)
    h = lax.reduce_window(h, -jnp.inf, lax.max, (1, 1, 2, 2), (1, 1, 2, 2), "VALID")
    h = h.reshape(h.shape[0], -1)                    # NCHW flatten, like torch .view
    h = jnp.maximum(h @ p["fc1_w"].T + p["fc1_b"], 0.0)
    h = jnp.maximum(h @ p["fc2_w"].T + p["fc2_b"], 0.0)
    return h @ p["fc3_w"].T + p["fc3_b"]


if __name__ == "__main__":
    key = jax.random.PRNGKey(0)
    k_p, k_x = jax.random.split(key)
    torch_params = init_torch_params(k_p)
    kparams = prepare_params(torch_params)
    # fc1's 16*5*5 input implies 32x32 images; batch = 2, NCHW like PyTorch.
    x = jax.random.normal(k_x, (2, 3, 32, 32), dtype=jnp.float32)

    out = jax.block_until_ready(the_model_forward(x, kparams))
    assert out.shape == (2, 10) and out.dtype == jnp.float32

    ref = jax.block_until_ready(reference_forward(x, torch_params))
    max_err = float(jnp.max(jnp.abs(out - ref)))
    assert max_err < 3e-2, f"mismatch vs f32 reference: max |err| = {max_err}"

    print("KERNEL_OK")
</pallas_src>

<mosaic_0001>
module attributes {stable_mosaic.version = 11 : i64} {
  func.func @_conv_relu_pool_kernel(%arg0: i32, %arg1: memref<392x75xbf16, #tpu.memory_space<vmem>>, %arg2: memref<392x75xbf16, #tpu.memory_space<vmem>>, %arg3: memref<392x75xbf16, #tpu.memory_space<vmem>>, %arg4: memref<392x75xbf16, #tpu.memory_space<vmem>>, %arg5: memref<75x128xbf16, #tpu.memory_space<vmem>>, %arg6: memref<1x128xf32, #tpu.memory_space<vmem>>, %arg7: memref<392x128xbf16, #tpu.memory_space<vmem>>) attributes {dimension_semantics = [#tpu.dimension_semantics<parallel>], iteration_bounds = array<i64: 1>, scalar_prefetch = 0 : i64, scratch_operands = 0 : i64, tpu.core_type = #tpu.core_type<tc>, window_params = [{transform_indices = @transform_0, window_bounds = array<i64: 392, 75>}, {transform_indices = @transform_1, window_bounds = array<i64: 392, 75>}, {transform_indices = @transform_2, window_bounds = array<i64: 392, 75>}, {transform_indices = @transform_3, window_bounds = array<i64: 392, 75>}, {pipeline_mode = #tpu.pipeline_mode<synchronous>, transform_indices = @transform_4, window_bounds = array<i64: 75, 128>}, {pipeline_mode = #tpu.pipeline_mode<synchronous>, transform_indices = @transform_5, window_bounds = array<i64: 1, 128>}, {transform_indices = @transform_6, window_bounds = array<i64: 392, 128>}]} {
    %c0 = arith.constant 0 : index
    %c0_0 = arith.constant 0 : index
    %0 = vector.load %arg5[%c0, %c0_0] : memref<75x128xbf16, #tpu.memory_space<vmem>>, vector<75x128xbf16>
    %c0_1 = arith.constant 0 : index
    %c0_2 = arith.constant 0 : index
    %1 = vector.load %arg1[%c0_1, %c0_2] : memref<392x75xbf16, #tpu.memory_space<vmem>>, vector<392x75xbf16>
    %cst = arith.constant dense<0.000000e+00> : vector<392x128xf32>
    %2 = tpu.matmul %1, %0, %cst {dimension_numbers = #tpu.dot_dimension_numbers<[1], [0], [0], [1], [0, 0, 1, 1], [], []>} : vector<392x75xbf16>, vector<75x128xbf16>, vector<392x128xf32> -> vector<392x128xf32>
    %c0_3 = arith.constant 0 : index
    %c0_4 = arith.constant 0 : index
    %3 = vector.load %arg2[%c0_3, %c0_4] : memref<392x75xbf16, #tpu.memory_space<vmem>>, vector<392x75xbf16>
    %cst_5 = arith.constant dense<0.000000e+00> : vector<392x128xf32>
    %4 = tpu.matmul %3, %0, %cst_5 {dimension_numbers = #tpu.dot_dimension_numbers<[1], [0], [0], [1], [0, 0, 1, 1], [], []>} : vector<392x75xbf16>, vector<75x128xbf16>, vector<392x128xf32> -> vector<392x128xf32>
    %5 = arith.maximumf %2, %4 : vector<392x128xf32>
    %c0_6 = arith.constant 0 : index
    %c0_7 = arith.constant 0 : index
    %6 = vector.load %arg3[%c0_6, %c0_7] : memref<392x75xbf16, #tpu.memory_space<vmem>>, vector<392x75xbf16>
    %cst_8 = arith.constant dense<0.000000e+00> : vector<392x128xf32>
    %7 = tpu.matmul %6, %0, %cst_8 {dimension_numbers = #tpu.dot_dimension_numbers<[1], [0], [0], [1], [0, 0, 1, 1], [], []>} : vector<392x75xbf16>, vector<75x128xbf16>, vector<392x128xf32> -> vector<392x128xf32>
    %c0_9 = arith.constant 0 : index
    %c0_10 = arith.constant 0 : index
    %8 = vector.load %arg4[%c0_9, %c0_10] : memref<392x75xbf16, #tpu.memory_space<vmem>>, vector<392x75xbf16>
    %cst_11 = arith.constant dense<0.000000e+00> : vector<392x128xf32>
    %9 = tpu.matmul %8, %0, %cst_11 {dimension_numbers = #tpu.dot_dimension_numbers<[1], [0], [0], [1], [0, 0, 1, 1], [], []>} : vector<392x75xbf16>, vector<75x128xbf16>, vector<392x128xf32> -> vector<392x128xf32>
    %10 = arith.maximumf %7, %9 : vector<392x128xf32>
    %11 = arith.maximumf %5, %10 : vector<392x128xf32>
    %c0_12 = arith.constant 0 : index
    %c0_13 = arith.constant 0 : index
    %12 = vector.load %arg6[%c0_12, %c0_13] : memref<1x128xf32, #tpu.memory_space<vmem>>, vector<1x128xf32>
    %13 = vector.broadcast %12 : vector<1x128xf32> to vector<392x128xf32>
    %14 = arith.addf %11, %13 : vector<392x128xf32>
    %cst_14 = arith.constant 0.000000e+00 : f32
    %15 = vector.broadcast %cst_14 : f32 to vector<392x128xf32>
    %16 = arith.maximumf %14, %15 : vector<392x128xf32>
    %17 = arith.truncf %16 : vector<392x128xf32> to vector<392x128xbf16>
    %c0_15 = arith.constant 0 : index
    %c0_16 = arith.constant 0 : index
    %18 = vector.load %arg7[%c0_15, %c0_16] : memref<392x128xbf16, #tpu.memory_space<vmem>>, vector<392x128xbf16>
    tpu.vector_store %arg7[%c0_15, %c0_16], %17 {strides = array<i32>} : memref<392x128xbf16, #tpu.memory_space<vmem>>, vector<392x128xbf16>,
    return
  }
  func.func @transform_0(%arg0: i32) -> (i32, i32) {
    %c0_i32 = arith.constant 0 : i32
    %c0_i32_0 = arith.constant 0 : i32
    return %arg0, %c0_i32 : i32, i32
  }
  func.func @transform_1(%arg0: i32) -> (i32, i32) {
    %c0_i32 = arith.constant 0 : i32
    %c0_i32_0 = arith.constant 0 : i32
    return %arg0, %c0_i32 : i32, i32
  }
  func.func @transform_2(%arg0: i32) -> (i32, i32) {
    %c0_i32 = arith.constant 0 : i32
    %c0_i32_0 = arith.constant 0 : i32
    return %arg0, %c0_i32 : i32, i32
  }
  func.func @transform_3(%arg0: i32) -> (i32, i32) {
    %c0_i32 = arith.constant 0 : i32
    %c0_i32_0 = arith.constant 0 : i32
    return %arg0, %c0_i32 : i32, i32
  }
  func.func @transform_4(%arg0: i32) -> (i32, i32) {
    %c0_i32 = arith.constant 0 : i32
    %c0_i32_0 = arith.constant 0 : i32
    %c0_i32_1 = arith.constant 0 : i32
    return %c0_i32, %c0_i32_0 : i32, i32
  }
  func.func @transform_5(%arg0: i32) -> (i32, i32) {
    %c0_i32 = arith.constant 0 : i32
    %c0_i32_0 = arith.constant 0 : i32
    %c0_i32_1 = arith.constant 0 : i32
    return %c0_i32, %c0_i32_0 : i32, i32
  }
  func.func @transform_6(%arg0: i32) -> (i32, i32) {
    %c0_i32 = arith.constant 0 : i32
    %c0_i32_0 = arith.constant 0 : i32
    return %arg0, %c0_i32 : i32, i32
  }
}

module attributes {stable_mosaic.version = 11 : i64} {
  func.func @_conv_relu_pool_kernel(%arg0: i32, %arg1: memref<56x150xbf16, #tpu.memory_space<vmem>>, %arg2: memref<56x150xbf16, #tpu.memory_space<vmem>>, %arg3: memref<56x150xbf16, #tpu.memory_space<vmem>>, %arg4: memref<56x150xbf16, #tpu.memory_space<vmem>>, %arg5: memref<150x128xbf16, #tpu.memory_space<vmem>>, %arg6: memref<1x128xf32, #tpu.memory_space<vmem>>, %arg7: memref<56x128xbf16, #tpu.memory_space<vmem>>) attributes {dimension_semantics = [#tpu.dimension_semantics<parallel>], iteration_bounds = array<i64: 1>, scalar_prefetch = 0 : i64, scratch_operands = 0 : i64, tpu.core_type = #tpu.core_type<tc>, window_params = [{transform_indices = @transform_0, window_bounds = array<i64: 56, 150>}, {transform_indices = @transform_1, window_bounds = array<i64: 56, 150>}, {transform_indices = @transform_2, window_bounds = array<i64: 56, 150>}, {transform_indices = @transform_3, window_bounds = array<i64: 56, 150>}, {pipeline_mode = #tpu.pipeline_mode<synchronous>, transform_indices = @transform_4, window_bounds = array<i64: 150, 128>}, {pipeline_mode = #tpu.pipeline_mode<synchronous>, transform_indices = @transform_5, window_bounds = array<i64: 1, 128>}, {transform_indices = @transform_6, window_bounds = array<i64: 56, 128>}]} {
    %c0 = arith.constant 0 : index
    %c0_0 = arith.constant 0 : index
    %0 = vector.load %arg5[%c0, %c0_0] : memref<150x128xbf16, #tpu.memory_space<vmem>>, vector<150x128xbf16>
    %c0_1 = arith.constant 0 : index
    %c0_2 = arith.constant 0 : index
    %1 = vector.load %arg1[%c0_1, %c0_2] : memref<56x150xbf16, #tpu.memory_space<vmem>>, vector<56x150xbf16>
    %cst = arith.constant dense<0.000000e+00> : vector<56x128xf32>
    %2 = tpu.matmul %1, %0, %cst {dimension_numbers = #tpu.dot_dimension_numbers<[1], [0], [0], [1], [0, 0, 1, 1], [], []>} : vector<56x150xbf16>, vector<150x128xbf16>, vector<56x128xf32> -> vector<56x128xf32>
    %c0_3 = arith.constant 0 : index
    %c0_4 = arith.constant 0 : index
    %3 = vector.load %arg2[%c0_3, %c0_4] : memref<56x150xbf16, #tpu.memory_space<vmem>>, vector<56x150xbf16>
    %cst_5 = arith.constant dense<0.000000e+00> : vector<56x128xf32>
    %4 = tpu.matmul %3, %0, %cst_5 {dimension_numbers = #tpu.dot_dimension_numbers<[1], [0], [0], [1], [0, 0, 1, 1], [], []>} : vector<56x150xbf16>, vector<150x128xbf16>, vector<56x128xf32> -> vector<56x128xf32>
    %5 = arith.maximumf %2, %4 : vector<56x128xf32>
    %c0_6 = arith.constant 0 : index
    %c0_7 = arith.constant 0 : index
    %6 = vector.load %arg3[%c0_6, %c0_7] : memref<56x150xbf16, #tpu.memory_space<vmem>>, vector<56x150xbf16>
    %cst_8 = arith.constant dense<0.000000e+00> : vector<56x128xf32>
    %7 = tpu.matmul %6, %0, %cst_8 {dimension_numbers = #tpu.dot_dimension_numbers<[1], [0], [0], [1], [0, 0, 1, 1], [], []>} : vector<56x150xbf16>, vector<150x128xbf16>, vector<56x128xf32> -> vector<56x128xf32>
    %c0_9 = arith.constant 0 : index
    %c0_10 = arith.constant 0 : index
    %8 = vector.load %arg4[%c0_9, %c0_10] : memref<56x150xbf16, #tpu.memory_space<vmem>>, vector<56x150xbf16>
    %cst_11 = arith.constant dense<0.000000e+00> : vector<56x128xf32>
    %9 = tpu.matmul %8, %0, %cst_11 {dimension_numbers = #tpu.dot_dimension_numbers<[1], [0], [0], [1], [0, 0, 1, 1], [], []>} : vector<56x150xbf16>, vector<150x128xbf16>, vector<56x128xf32> -> vector<56x128xf32>
    %10 = arith.maximumf %7, %9 : vector<56x128xf32>
    %11 = arith.maximumf %5, %10 : vector<56x128xf32>
    %c0_12 = arith.constant 0 : index
    %c0_13 = arith.constant 0 : index
    %12 = vector.load %arg6[%c0_12, %c0_13] : memref<1x128xf32, #tpu.memory_space<vmem>>, vector<1x128xf32>
    %13 = vector.broadcast %12 : vector<1x128xf32> to vector<56x128xf32>
    %14 = arith.addf %11, %13 : vector<56x128xf32>
    %cst_14 = arith.constant 0.000000e+00 : f32
    %15 = vector.broadcast %cst_14 : f32 to vector<56x128xf32>
    %16 = arith.maximumf %14, %15 : vector<56x128xf32>
    %17 = arith.truncf %16 : vector<56x128xf32> to vector<56x128xbf16>
    %c0_15 = arith.constant 0 : index
    %c0_16 = arith.constant 0 : index
    %18 = vector.load %arg7[%c0_15, %c0_16] : memref<56x128xbf16, #tpu.memory_space<vmem>>, vector<56x128xbf16>
    tpu.vector_store %arg7[%c0_15, %c0_16], %17 {strides = array<i32>} : memref<56x128xbf16, #tpu.memory_space<vmem>>, vector<56x128xbf16>,
    return
  }
  func.func @transform_0(%arg0: i32) -> (i32, i32) {
    %c0_i32 = arith.constant 0 : i32
    %c0_i32_0 = arith.constant 0 : i32
    return %arg0, %c0_i32 : i32, i32
  }
  func.func @transform_1(%arg0: i32) -> (i32, i32) {
    %c0_i32 = arith.constant 0 : i32
    %c0_i32_0 = arith.constant 0 : i32
    return %arg0, %c0_i32 : i32, i32
  }
  func.func @transform_2(%arg0: i32) -> (i32, i32) {
    %c0_i32 = arith.constant 0 : i32
    %c0_i32_0 = arith.constant 0 : i32
    return %arg0, %c0_i32 : i32, i32
  }
  func.func @transform_3(%arg0: i32) -> (i32, i32) {
    %c0_i32 = arith.constant 0 : i32
    %c0_i32_0 = arith.constant 0 : i32
    return %arg0, %c0_i32 : i32, i32
  }
  func.func @transform_4(%arg0: i32) -> (i32, i32) {
    %c0_i32 = arith.constant 0 : i32
    %c0_i32_0 = arith.constant 0 : i32
    %c0_i32_1 = arith.constant 0 : i32
    return %c0_i32, %c0_i32_0 : i32, i32
  }
  func.func @transform_5(%arg0: i32) -> (i32, i32) {
    %c0_i32 = arith.constant 0 : i32
    %c0_i32_0 = arith.constant 0 : i32
    %c0_i32_1 = arith.constant 0 : i32
    return %c0_i32, %c0_i32_0 : i32, i32
  }
  func.func @transform_6(%arg0: i32) -> (i32, i32) {
    %c0_i32 = arith.constant 0 : i32
    %c0_i32_0 = arith.constant 0 : i32
    return %arg0, %c0_i32 : i32, i32
  }
}

module attributes {stable_mosaic.version = 11 : i64} {
  func.func @_mlp_kernel(%arg0: i32, %arg1: memref<8x400xbf16, #tpu.memory_space<vmem>>, %arg2: memref<400x128xbf16, #tpu.memory_space<vmem>>, %arg3: memref<1x128xf32, #tpu.memory_space<vmem>>, %arg4: memref<128x128xbf16, #tpu.memory_space<vmem>>, %arg5: memref<1x128xf32, #tpu.memory_space<vmem>>, %arg6: memref<128x128xbf16, #tpu.memory_space<vmem>>, %arg7: memref<1x128xf32, #tpu.memory_space<vmem>>, %arg8: memref<8x128xf32, #tpu.memory_space<vmem>>) attributes {dimension_semantics = [#tpu.dimension_semantics<parallel>], iteration_bounds = array<i64: 1>, scalar_prefetch = 0 : i64, scratch_operands = 0 : i64, tpu.core_type = #tpu.core_type<tc>, window_params = [{transform_indices = @transform_0, window_bounds = array<i64: 8, 400>}, {pipeline_mode = #tpu.pipeline_mode<synchronous>, transform_indices = @transform_1, window_bounds = array<i64: 400, 128>}, {pipeline_mode = #tpu.pipeline_mode<synchronous>, transform_indices = @transform_2, window_bounds = array<i64: 1, 128>}, {pipeline_mode = #tpu.pipeline_mode<synchronous>, transform_indices = @transform_3, window_bounds = array<i64: 128, 128>}, {pipeline_mode = #tpu.pipeline_mode<synchronous>, transform_indices = @transform_4, window_bounds = array<i64: 1, 128>}, {pipeline_mode = #tpu.pipeline_mode<synchronous>, transform_indices = @transform_5, window_bounds = array<i64: 128, 128>}, {pipeline_mode = #tpu.pipeline_mode<synchronous>, transform_indices = @transform_6, window_bounds = array<i64: 1, 128>}, {transform_indices = @transform_7, window_bounds = array<i64: 8, 128>}]} {
    %c0 = arith.constant 0 : index
    %c0_0 = arith.constant 0 : index
    %0 = vector.load %arg1[%c0, %c0_0] : memref<8x400xbf16, #tpu.memory_space<vmem>>, vector<8x400xbf16>
    %c0_1 = arith.constant 0 : index
    %c0_2 = arith.constant 0 : index
    %1 = vector.load %arg2[%c0_1, %c0_2] : memref<400x128xbf16, #tpu.memory_space<vmem>>, vector<400x128xbf16>
    %cst = arith.constant dense<0.000000e+00> : vector<8x128xf32>
    %2 = tpu.matmul %0, %1, %cst {dimension_numbers = #tpu.dot_dimension_numbers<[1], [0], [0], [1], [0, 0, 1, 1], [], []>} : vector<8x400xbf16>, vector<400x128xbf16>, vector<8x128xf32> -> vector<8x128xf32>
    %c0_3 = arith.constant 0 : index
    %c0_4 = arith.constant 0 : index
    %3 = vector.load %arg3[%c0_3, %c0_4] : memref<1x128xf32, #tpu.memory_space<vmem>>, vector<1x128xf32>
    %4 = vector.broadcast %3 : vector<1x128xf32> to vector<8x128xf32>
    %5 = arith.addf %2, %4 : vector<8x128xf32>
    %cst_5 = arith.constant 0.000000e+00 : f32
    %6 = vector.broadcast %cst_5 : f32 to vector<8x128xf32>
    %7 = arith.maximumf %5, %6 : vector<8x128xf32>
    %8 = arith.truncf %7 : vector<8x128xf32> to vector<8x128xbf16>
    %c0_6 = arith.constant 0 : index
    %c0_7 = arith.constant 0 : index
    %9 = vector.load %arg4[%c0_6, %c0_7] : memref<128x128xbf16, #tpu.memory_space<vmem>>, vector<128x128xbf16>
    %cst_8 = arith.constant dense<0.000000e+00> : vector<8x128xf32>
    %10 = tpu.matmul %8, %9, %cst_8 {dimension_numbers = #tpu.dot_dimension_numbers<[1], [0], [0], [1], [0, 0, 1, 1], [], []>} : vector<8x128xbf16>, vector<128x128xbf16>, vector<8x128xf32> -> vector<8x128xf32>
    %c0_9 = arith.constant 0 : index
    %c0_10 = arith.constant 0 : index
    %11 = vector.load %arg5[%c0_9, %c0_10] : memref<1x128xf32, #tpu.memory_space<vmem>>, vector<1x128xf32>
    %12 = vector.broadcast %11 : vector<1x128xf32> to vector<8x128xf32>
    %13 = arith.addf %10, %12 : vector<8x128xf32>
    %cst_11 = arith.constant 0.000000e+00 : f32
    %14 = vector.broadcast %cst_11 : f32 to vector<8x128xf32>
    %15 = arith.maximumf %13, %14 : vector<8x128xf32>
    %16 = arith.truncf %15 : vector<8x128xf32> to vector<8x128xbf16>
    %c0_12 = arith.constant 0 : index
    %c0_13 = arith.constant 0 : index
    %17 = vector.load %arg6[%c0_12, %c0_13] : memref<128x128xbf16, #tpu.memory_space<vmem>>, vector<128x128xbf16>
    %cst_14 = arith.constant dense<0.000000e+00> : vector<8x128xf32>
    %18 = tpu.matmul %16, %17, %cst_14 {dimension_numbers = #tpu.dot_dimension_numbers<[1], [0], [0], [1], [0, 0, 1, 1], [], []>} : vector<8x128xbf16>, vector<128x128xbf16>, vector<8x128xf32> -> vector<8x128xf32>
    %c0_15 = arith.constant 0 : index
    %c0_16 = arith.constant 0 : index
    %19 = vector.load %arg7[%c0_15, %c0_16] : memref<1x128xf32, #tpu.memory_space<vmem>>, vector<1x128xf32>
    %20 = vector.broadcast %19 : vector<1x128xf32> to vector<8x128xf32>
    %21 = arith.addf %18, %20 : vector<8x128xf32>
    %c0_17 = arith.constant 0 : index
    %c0_18 = arith.constant 0 : index
    %22 = vector.load %arg8[%c0_17, %c0_18] : memref<8x128xf32, #tpu.memory_space<vmem>>, vector<8x128xf32>
    tpu.vector_store %arg8[%c0_17, %c0_18], %21 {strides = array<i32>} : memref<8x128xf32, #tpu.memory_space<vmem>>, vector<8x128xf32>,
    return
  }
  func.func @transform_0(%arg0: i32) -> (i32, i32) {
    %c0_i32 = arith.constant 0 : i32
    %c0_i32_0 = arith.constant 0 : i32
    return %arg0, %c0_i32 : i32, i32
  }
  func.func @transform_1(%arg0: i32) -> (i32, i32) {
    %c0_i32 = arith.constant 0 : i32
    %c0_i32_0 = arith.constant 0 : i32
    %c0_i32_1 = arith.constant 0 : i32
    return %c0_i32, %c0_i32_0 : i32, i32
  }
  func.func @transform_2(%arg0: i32) -> (i32, i32) {
    %c0_i32 = arith.constant 0 : i32
    %c0_i32_0 = arith.constant 0 : i32
    %c0_i32_1 = arith.constant 0 : i32
    return %c0_i32, %c0_i32_0 : i32, i32
  }
  func.func @transform_3(%arg0: i32) -> (i32, i32) {
    %c0_i32 = arith.constant 0 : i32
    %c0_i32_0 = arith.constant 0 : i32
    %c0_i32_1 = arith.constant 0 : i32
    return %c0_i32, %c0_i32_0 : i32, i32
  }
  func.func @transform_4(%arg0: i32) -> (i32, i32) {
    %c0_i32 = arith.constant 0 : i32
    %c0_i32_0 = arith.constant 0 : i32
    %c0_i32_1 = arith.constant 0 : i32
    return %c0_i32, %c0_i32_0 : i32, i32
  }
  func.func @transform_5(%arg0: i32) -> (i32, i32) {
    %c0_i32 = arith.constant 0 : i32
    %c0_i32_0 = arith.constant 0 : i32
    %c0_i32_1 = arith.constant 0 : i32
    return %c0_i32, %c0_i32_0 : i32, i32
  }
  func.func @transform_6(%arg0: i32) -> (i32, i32) {
    %c0_i32 = arith.constant 0 : i32
    %c0_i32_0 = arith.constant 0 : i32
    %c0_i32_1 = arith.constant 0 : i32
    return %c0_i32, %c0_i32_0 : i32, i32
  }
  func.func @transform_7(%arg0: i32) -> (i32, i32) {
    %c0_i32 = arith.constant 0 : i32
    %c0_i32_0 = arith.constant 0 : i32
    return %arg0, %c0_i32 : i32, i32
  }
}

</mosaic_0001>

<bundles_post_ra>
// kernel: the_model_forward.3
= control target key start
LH: loop header
LB: loop body
LE: loop exit
PB: predicated region body
PF: predicated region fallthrough
CT: control target
= control target key end

     0   :  { %vm311_vm0 = vcmask 1044480   ;;  %vm312_vm1 = vcmask 1045504   ;;  %v2693_v2 = vmov 65535   ;;  %vm235_vm2 = vcmask 613376   ;;  %s3281_s4 = inlined_call_operand.vmem [shape: bf16[75,128], index: 4, kind: input, shape index: {}]   ;;  %s3282_s0 = inlined_call_operand.vmem [shape: bf16[392,75], index: 0, kind: input, shape index: {}]   ;;  %s3283_s1 = inlined_call_operand.vmem [shape: bf16[392,75], index: 1, kind: input, shape index: {}]   ;;  %s3284_s2 = inlined_call_operand.vmem [shape: bf16[392,75], index: 2, kind: input, shape index: {}]   ;;  %s3285_s3 = inlined_call_operand.vmem [shape: bf16[392,75], index: 3, kind: input, shape index: {}]   ;;  %s3286_s5 = inlined_call_operand.vmem [shape: f32[1,128], index: 5, kind: input, shape index: {}]   ;;  %s3287_s6 = inlined_call_operand.vmem [shape: bf16[392,128], index: 6, kind: output, shape index: {}]  }
   0x1   :  { %v2056_v0 = vld [vmem:[%s3281_s4 + $0x20] sm:$0xf]  ;;  %v2450_v1 = vld [vmem:[%s3281_s4 + $0x20] sm:$0x30]  ;;  %v313_v3 = vsel %vm311_vm0, 4294967295, %v2693_v2  ;;  %v2449_v7 = vld [vmem:[%s3281_s4 + $0x18] sm:$0xff] }
   0x2   :  { %v2057_v4 = vor.u32 %v2450_v1, %v2056_v0  ;;  %v314_v5 = vsel %vm312_vm1, %v313_v3, 0  ;;  %v2448_v8 = vld [vmem:[%s3281_s4 + $0x10] sm:$0xff]  ;;  %v2447_v9 = vld [vmem:[%s3281_s4 + $0x8] sm:$0xff]  ;;  %v2446_v10 = vld [vmem:[%s3281_s4] sm:$0xff] }
   0x3   :  { %v2451_v11 = vld [vmem:[%s3282_s0] sm:$0xff]  ;;  %v2452_v15 = vld [vmem:[%s3282_s0 + $0x8] sm:$0xff]  ;;  %v2453_v19 = vld [vmem:[%s3282_s0 + $0x10] sm:$0xff] }
   0x4   :  { %v316_v6 = vand.u32 %v2057_v4, %v314_v5  ;;  %v2475_v12 = vld [vmem:[%s3283_s1] sm:$0xff]  ;;  %v2476_v16 = vld [vmem:[%s3283_s1 + $0x8] sm:$0xff]  ;;  %v2477_v20 = vld [vmem:[%s3283_s1 + $0x10] sm:$0xff] }
   0x5   :  { %v2499_v13 = vld [vmem:[%s3284_s2] sm:$0xff]  ;;  %v2500_v17 = vld [vmem:[%s3284_s2 + $0x8] sm:$0xff]  ;;  %v2501_v21 = vld [vmem:[%s3284_s2 + $0x10] sm:$0xff] }
   0x6   :  { %321 = vmatpush.bf16.msra.mxu0 %v316_v6  ;;  %701 = vmatpush.bf16.msra.mxu1 %v316_v6  ;;  %v2523_v14 = vld [vmem:[%s3285_s3] sm:$0xff]  ;;  %v2524_v18 = vld [vmem:[%s3285_s3 + $0x8] sm:$0xff]  ;;  %v2525_v22 = vld [vmem:[%s3285_s3 + $0x10] sm:$0xff] }
   0x7   :  { %1130 = vmatpush.bf16.msra.mxu2 %v316_v6  ;;  %1510 = vmatpush.bf16.msra.mxu3 %v316_v6  ;;  %v2454_v23 = vld [vmem:[%s3282_s0 + $0x18] sm:$0xff]  ;;  %v2455_v27 = vld [vmem:[%s3282_s0 + $0x20] sm:$0xff]  ;;  %v2456_v31 = vld [vmem:[%s3282_s0 + $0x28] sm:$0xff] }
   0x8   :  { %v2478_v24 = vld [vmem:[%s3283_s1 + $0x18] sm:$0xff]  ;;  %v2479_v28 = vld [vmem:[%s3283_s1 + $0x20] sm:$0xff]  ;;  %v2480_v32 = vld [vmem:[%s3283_s1 + $0x28] sm:$0xff] }
   0x9   :  { %v2502_v25 = vld [vmem:[%s3284_s2 + $0x18] sm:$0xff]  ;;  %v2503_v29 = vld [vmem:[%s3284_s2 + $0x20] sm:$0xff]  ;;  %v2504_v33 = vld [vmem:[%s3284_s2 + $0x28] sm:$0xff] }
   0xa   :  { %322 = vmatpush.bf16.msra.mxu0 %v2449_v7  ;;  %702 = vmatpush.bf16.msra.mxu1 %v2449_v7  ;;  %v2526_v26 = vld [vmem:[%s3285_s3 + $0x18] sm:$0xff]  ;;  %v2527_v30 = vld [vmem:[%s3285_s3 + $0x20] sm:$0xff]  ;;  %v2528_v34 = vld [vmem:[%s3285_s3 + $0x28] sm:$0xff] }
   0xb   :  { %1131 = vmatpush.bf16.msra.mxu2 %v2449_v7  ;;  %1511 = vmatpush.bf16.msra.mxu3 %v2449_v7  ;;  %v2457_v35 = vld [vmem:[%s3282_s0 + $0x30] sm:$0xff]  ;;  %v2458_v39 = vld [vmem:[%s3282_s0 + $0x38] sm:$0xff]  ;;  %v2459_v43 = vld [vmem:[%s3282_s0 + $0x40] sm:$0xff] }
   0xc   :  { %v2481_v36 = vld [vmem:[%s3283_s1 + $0x30] sm:$0xff]  ;;  %v2482_v40 = vld [vmem:[%s3283_s1 + $0x38] sm:$0xff]  ;;  %v2483_v44 = vld [vmem:[%s3283_s1 + $0x40] sm:$0xff] }
   0xd   :  { %v2505_v37 = vld [vmem:[%s3284_s2 + $0x30] sm:$0xff]  ;;  %v2506_v41 = vld [vmem:[%s3284_s2 + $0x38] sm:$0xff]  ;;  %v2507_v47 = vld [vmem:[%s3284_s2 + $0x40] sm:$0xff] }
   0xe   :  { %323 = vmatpush.bf16.msra.mxu0 %v2448_v8  ;;  %703 = vmatpush.bf16.msra.mxu1 %v2448_v8  ;;  %v2529_v38 = vld [vmem:[%s3285_s3 + $0x30] sm:$0xff]  ;;  %v2530_v42 = vld [vmem:[%s3285_s3 + $0x38] sm:$0xff]  ;;  %v2531_v48 = vld [vmem:[%s3285_s3 + $0x40] sm:$0xff] }
   0xf   :  { %1132 = vmatpush.bf16.msra.mxu2 %v2448_v8  ;;  %1512 = vmatpush.bf16.msra.mxu3 %v2448_v8  ;;  %v2894_v56 = vld [vmem:[%s3286_s5] ss:$0 sm:$0xff]  ;;  %v2460_v59 = vld [vmem:[%s3282_s0 + $0x48] sm:$0xff] }
  0x10   :  { %v2484_v60 = vld [vmem:[%s3283_s1 + $0x48] sm:$0xff] }
  0x11   :  { %v2508_v1 = vld [vmem:[%s3284_s2 + $0x48] sm:$0xff] }
  0x12   :  { %324 = vmatpush.bf16.msra.mxu0 %v2447_v9  ;;  %704 = vmatpush.bf16.msra.mxu1 %v2447_v9  ;;  %v2532_v2 = vld [vmem:[%s3285_s3 + $0x48] sm:$0xff] }
  0x13   :  { %1133 = vmatpush.bf16.msra.mxu2 %v2447_v9  ;;  %1513 = vmatpush.bf16.msra.mxu3 %v2447_v9 }
  0x16   :  { %325 = vmatpush.bf16.msra.mxu0 %v2446_v10  ;;  %705 = vmatpush.bf16.msra.mxu1 %v2446_v10 }
  0x17   :  { %1134 = vmatpush.bf16.msra.mxu2 %v2446_v10  ;;  %1514 = vmatpush.bf16.msra.mxu3 %v2446_v10 }
  0x19   :  { %2058 = vmatmul.msk.bf16.vlgmr.msra.gmra.mxu0 %vm235_vm2, %v2451_v11  ;;  %2179 = vmatmul.msk.bf16.vlgmr.msra.gmra.mxu1 %vm235_vm2, %v2475_v12 }
  0x1a   :  { %2300 = vmatmul.msk.bf16.vlgmr.msra.gmra.mxu2 %vm235_vm2, %v2499_v13  ;;  %2421 = vmatmul.msk.bf16.vlgmr.msra.gmra.mxu3 %vm235_vm2, %v2523_v14 }
  0x29   :  { %2059 = vmatmul.msk.bf16.gmra.mxu0 %vm235_vm2, %v2452_v15  ;;  %2180 = vmatmul.msk.bf16.gmra.mxu1 %vm235_vm2, %v2476_v16 }
  0x2a   :  { %2301 = vmatmul.msk.bf16.gmra.mxu2 %vm235_vm2, %v2500_v17  ;;  %2422 = vmatmul.msk.bf16.gmra.mxu3 %vm235_vm2, %v2524_v18  ;;  %v2461_v18 = vld [vmem:[%s3282_s0 + $0x50] sm:$0xff] }
  0x39   :  { %2060 = vmatmul.msk.bf16.gmra.mxu0 %vm235_vm2, %v2453_v19  ;;  %2181 = vmatmul.msk.bf16.gmra.mxu1 %vm235_vm2, %v2477_v20  ;;  %v2485_v19 = vld [vmem:[%s3283_s1 + $0x50] sm:$0xff] }
  0x3a   :  { %2302 = vmatmul.msk.bf16.gmra.mxu2 %vm235_vm2, %v2501_v21  ;;  %2423 = vmatmul.msk.bf16.gmra.mxu3 %vm235_vm2, %v2525_v22 }
  0x49   :  { %2061 = vmatmul.msk.bf16.gmra.mxu0 %vm235_vm2, %v2454_v23  ;;  %2182 = vmatmul.msk.bf16.gmra.mxu1 %vm235_vm2, %v2478_v24  ;;  %v2509_v24 = vld [vmem:[%s3284_s2 + $0x50] sm:$0xff] }
  0x4a   :  { %2303 = vmatmul.msk.bf16.gmra.mxu2 %vm235_vm2, %v2502_v25  ;;  %2424 = vmatmul.msk.bf16.gmra.mxu3 %vm235_vm2, %v2526_v26  ;;  %v2533_v25 = vld [vmem:[%s3285_s3 + $0x50] sm:$0xff] }
  0x59   :  { %2062 = vmatmul.msk.bf16.gmra.mxu0 %vm235_vm2, %v2455_v27  ;;  %2183 = vmatmul.msk.bf16.gmra.mxu1 %vm235_vm2, %v2479_v28 }
  0x5a   :  { %2304 = vmatmul.msk.bf16.gmra.mxu2 %vm235_vm2, %v2503_v29  ;;  %2425 = vmatmul.msk.bf16.gmra.mxu3 %vm235_vm2, %v2527_v30 }
  0x69   :  { %2063 = vmatmul.msk.bf16.gmra.mxu0 %vm235_vm2, %v2456_v31  ;;  %2184 = vmatmul.msk.bf16.gmra.mxu1 %vm235_vm2, %v2480_v32 }
  0x6a   :  { %2305 = vmatmul.msk.bf16.gmra.mxu2 %vm235_vm2, %v2504_v33  ;;  %2426 = vmatmul.msk.bf16.gmra.mxu3 %vm235_vm2, %v2528_v34 }
  0x79   :  { %2064 = vmatmul.msk.bf16.gmra.mxu0 %vm235_vm2, %v2457_v35  ;;  %2185 = vmatmul.msk.bf16.gmra.mxu1 %vm235_vm2, %v2481_v36 }
  0x7a   :  { %2306 = vmatmul.msk.bf16.gmra.mxu2 %vm235_vm2, %v2505_v37  ;;  %2427 = vmatmul.msk.bf16.gmra.mxu3 %vm235_vm2, %v2529_v38 }
  0x89   :  { %2065 = vmatmul.msk.bf16.gmra.mxu0 %vm235_vm2, %v2458_v39  ;;  %2186 = vmatmul.msk.bf16.gmra.mxu1 %vm235_vm2, %v2482_v40 }
  0x8a   :  { %2307 = vmatmul.msk.bf16.gmra.mxu2 %vm235_vm2, %v2506_v41  ;;  %2428 = vmatmul.msk.bf16.gmra.mxu3 %vm235_vm2, %v2530_v42  ;;  %v2462_v41 = vld [vmem:[%s3282_s0 + $0x58] sm:$0xff] }
  0x8b   :  { %v2486_v42 = vld [vmem:[%s3283_s1 + $0x58] sm:$0xff] }
  0x96   :  { %v327_v45 = vpop.f32.mrf.mxu0  ;;  %v707_v46 = vpop.f32.mrf.mxu1 }
  0x97   :  { %v831_v53 = vmax.f32 %v327_v45, %v707_v46 }
  0x99   :  { %2066 = vmatmul.msk.bf16.gmra.mxu0 %vm235_vm2, %v2459_v43  ;;  %2187 = vmatmul.msk.bf16.gmra.mxu1 %vm235_vm2, %v2483_v44 }
  0x9a   :  { %2308 = vmatmul.msk.bf16.gmra.mxu2 %vm235_vm2, %v2507_v47  ;;  %2429 = vmatmul.msk.bf16.gmra.mxu3 %vm235_vm2, %v2531_v48  ;;  %v2510_v47 = vld [vmem:[%s3284_s2 + $0x58] sm:$0xff] }
  0x9b   :  { %v2534_v48 = vld [vmem:[%s3285_s3 + $0x58] sm:$0xff] }
  0x9d   :  { %v1136_v49 = vpop.f32.mrf.mxu2  ;;  %v1516_v50 = vpop.f32.mrf.mxu3 }
  0x9e   :  { %v329_v51 = vpop.f32.mrf.mxu0  ;;  %v709_v52 = vpop.f32.mrf.mxu1  ;;  %v1640_v54 = vmax.f32 %v1136_v49, %v1516_v50 }
  0x9f   :  { %v832_v61 = vmax.f32 %v329_v51, %v709_v52 }
  0xa0   :  { %v1689_v55 = vmax.f32 %v831_v53, %v1640_v54 }
  0xa2   :  { %v1742_v3 = vadd.f32 %v2894_v56, %v1689_v55 }
  0xa4   :  { %v1791_v6 = vmax.f32 %v1742_v3, 0.0 }
  0xa5   :  { %v1138_v57 = vpop.f32.mrf.mxu2  ;;  %v1518_v58 = vpop.f32.mrf.mxu3 }
  0xa6   :  { %v1641_v62 = vmax.f32 %v1138_v57, %v1518_v58  ;;  %v332_v63 = vpop.f32.mrf.mxu0  ;;  %v712_v0 = vpop.f32.mrf.mxu1 }
  0xa7   :  { %v833_v13 = vmax.f32 %v332_v63, %v712_v0 }
  0xa8   :  { %v1690_v4 = vmax.f32 %v832_v61, %v1641_v62 }
  0xa9   :  { %2067 = vmatmul.msk.bf16.gmra.mxu0 %vm235_vm2, %v2460_v59  ;;  %2188 = vmatmul.msk.bf16.gmra.mxu1 %vm235_vm2, %v2484_v60 }
  0xaa   :  { %v1743_v5 = vadd.f32 %v2894_v56, %v1690_v4  ;;  %2309 = vmatmul.msk.bf16.gmra.mxu2 %vm235_vm2, %v2508_v1  ;;  %2430 = vmatmul.msk.bf16.gmra.mxu3 %vm235_vm2, %v2532_v2  ;;  %v2463_v1 = vld [vmem:[%s3282_s0 + $0x60] sm:$0xff] }
  0xab   :  { %v2487_v2 = vld [vmem:[%s3283_s1 + $0x60] sm:$0xff] }
  0xac   :  { %v1792_v7 = vmax.f32 %v1743_v5, 0.0 }
  0xad   :  { %v1141_v8 = vpop.f32.mrf.mxu2  ;;  %v1521_v9 = vpop.f32.mrf.mxu3 }
  0xae   :  { %v2550_v10 = vpack.c.bf16 %v1792_v7, %v1791_v6  ;;  %v334_v11 = vpop.f32.mrf.mxu0  ;;  %v714_v12 = vpop.f32.mrf.mxu1  ;;  %v1642_v14 = vmax.f32 %v1141_v8, %v1521_v9  ;;  %v2511_v7 = vld [vmem:[%s3284_s2 + $0x60] sm:$0xff] }
  0xaf   :  { %v834_v20 = vmax.f32 %v334_v11, %v714_v12  ;;  %v2535_v8 = vld [vmem:[%s3285_s3 + $0x60] sm:$0xff] }
  0xb0   :  { %2551 = vst [vmem:[%s3287_s6] sm:$0xff] %v2550_v10   ;;  %v1691_v15 = vmax.f32 %v833_v13, %v1642_v14 }
  0xb2   :  { %v1744_v26 = vadd.f32 %v2894_v56, %v1691_v15 }
  0xb4   :  { %v1793_v29 = vmax.f32 %v1744_v26, 0.0 }
  0xb5   :  { %v1143_v16 = vpop.f32.mrf.mxu2  ;;  %v1523_v17 = vpop.f32.mrf.mxu3 }
  0xb6   :  { %v1643_v21 = vmax.f32 %v1143_v16, %v1523_v17  ;;  %v337_v22 = vpop.f32.mrf.mxu0  ;;  %v717_v23 = vpop.f32.mrf.mxu1 }
  0xb7   :  { %v835_v36 = vmax.f32 %v337_v22, %v717_v23 }
  0xb8   :  { %v1692_v27 = vmax.f32 %v834_v20, %v1643_v21 }
  0xb9   :  { %2068 = vmatmul.msk.bf16.gmra.mxu0 %vm235_vm2, %v2461_v18  ;;  %2189 = vmatmul.msk.bf16.gmra.mxu1 %vm235_vm2, %v2485_v19 }
  0xba   :  { %v1745_v28 = vadd.f32 %v2894_v56, %v1692_v27  ;;  %2310 = vmatmul.msk.bf16.gmra.mxu2 %vm235_vm2, %v2509_v24  ;;  %2431 = vmatmul.msk.bf16.gmra.mxu3 %vm235_vm2, %v2533_v25  ;;  %v2464_v24 = vld [vmem:[%s3282_s0 + $0x68] sm:$0xff] }
  0xbb   :  { %v2488_v25 = vld [vmem:[%s3283_s1 + $0x68] sm:$0xff] }
  0xbc   :  { %v1794_v30 = vmax.f32 %v1745_v28, 0.0 }
  0xbd   :  { %v1146_v31 = vpop.f32.mrf.mxu2  ;;  %v1526_v32 = vpop.f32.mrf.mxu3 }
  0xbe   :  { %v2555_v33 = vpack.c.bf16 %v1794_v30, %v1793_v29  ;;  %v339_v34 = vpop.f32.mrf.mxu0  ;;  %v719_v35 = vpop.f32.mrf.mxu1  ;;  %v1644_v37 = vmax.f32 %v1146_v31, %v1526_v32  ;;  %v2512_v30 = vld [vmem:[%s3284_s2 + $0x68] sm:$0xff] }
  0xbf   :  { %v836_v43 = vmax.f32 %v339_v34, %v719_v35  ;;  %v2536_v31 = vld [vmem:[%s3285_s3 + $0x68] sm:$0xff] }
  0xc0   :  { %2667 = vst [vmem:[%s3287_s6 + $0x8] sm:$0xff] %v2555_v33   ;;  %v1693_v38 = vmax.f32 %v835_v36, %v1644_v37 }
  0xc2   :  { %v1746_v49 = vadd.f32 %v2894_v56, %v1693_v38 }
  0xc4   :  { %v1795_v52 = vmax.f32 %v1746_v49, 0.0 }
  0xc5   :  { %v1148_v39 = vpop.f32.mrf.mxu2  ;;  %v1528_v40 = vpop.f32.mrf.mxu3 }
  0xc6   :  { %v1645_v44 = vmax.f32 %v1148_v39, %v1528_v40  ;;  %v342_v45 = vpop.f32.mrf.mxu0  ;;  %v722_v46 = vpop.f32.mrf.mxu1 }
  0xc7   :  { %v837_v60 = vmax.f32 %v342_v45, %v722_v46 }
  0xc8   :  { %v1694_v50 = vmax.f32 %v836_v43, %v1645_v44 }
  0xc9   :  { %2069 = vmatmul.msk.bf16.gmra.mxu0 %vm235_vm2, %v2462_v41  ;;  %2190 = vmatmul.msk.bf16.gmra.mxu1 %vm235_vm2, %v2486_v42 }
  0xca   :  { %v1747_v51 = vadd.f32 %v2894_v56, %v1694_v50  ;;  %2311 = vmatmul.msk.bf16.gmra.mxu2 %vm235_vm2, %v2510_v47  ;;  %2432 = vmatmul.msk.bf16.gmra.mxu3 %vm235_vm2, %v2534_v48  ;;  %v2465_v47 = vld [vmem:[%s3282_s0 + $0x70] sm:$0xff] }
  0xcb   :  { %v2489_v48 = vld [vmem:[%s3283_s1 + $0x70] sm:$0xff] }
  0xcc   :  { %v1796_v53 = vmax.f32 %v1747_v51, 0.0 }
  0xcd   :  { %v1151_v54 = vpop.f32.mrf.mxu2  ;;  %v1531_v55 = vpop.f32.mrf.mxu3 }
  0xce   :  { %v2560_v57 = vpack.c.bf16 %v1796_v53, %v1795_v52  ;;  %v344_v58 = vpop.f32.mrf.mxu0  ;;  %v724_v59 = vpop.f32.mrf.mxu1  ;;  %v1646_v61 = vmax.f32 %v1151_v54, %v1531_v55  ;;  %v2513_v53 = vld [vmem:[%s3284_s2 + $0x70] sm:$0xff] }
  0xcf   :  { %v838_v3 = vmax.f32 %v344_v58, %v724_v59  ;;  %v2537_v54 = vld [vmem:[%s3285_s3 + $0x70] sm:$0xff] }
  0xd0   :  { %2668 = vst [vmem:[%s3287_s6 + $0x10] sm:$0xff] %v2560_v57   ;;  %v1695_v62 = vmax.f32 %v837_v60, %v1646_v61 }
  0xd2   :  { %v1748_v9 = vadd.f32 %v2894_v56, %v1695_v62 }
  0xd4   :  { %v1797_v12 = vmax.f32 %v1748_v9, 0.0 }
  0xd5   :  { %v1153_v63 = vpop.f32.mrf.mxu2  ;;  %v1533_v0 = vpop.f32.mrf.mxu3 }
  0xd6   :  { %v1647_v4 = vmax.f32 %v1153_v63, %v1533_v0  ;;  %v347_v5 = vpop.f32.mrf.mxu0  ;;  %v727_v6 = vpop.f32.mrf.mxu1 }
  0xd7   :  { %v839_v19 = vmax.f32 %v347_v5, %v727_v6 }
  0xd8   :  { %v1696_v10 = vmax.f32 %v838_v3, %v1647_v4 }
  0xd9   :  { %2070 = vmatmul.msk.bf16.gmra.mxu0 %vm235_vm2, %v2463_v1  ;;  %2191 = vmatmul.msk.bf16.gmra.mxu1 %vm235_vm2, %v2487_v2 }
  0xda   :  { %v1749_v11 = vadd.f32 %v2894_v56, %v1696_v10  ;;  %2312 = vmatmul.msk.bf16.gmra.mxu2 %vm235_vm2, %v2511_v7  ;;  %2433 = vmatmul.msk.bf16.gmra.mxu3 %vm235_vm2, %v2535_v8  ;;  %v2466_v7 = vld [vmem:[%s3282_s0 + $0x78] sm:$0xff] }
  0xdb   :  { %v2490_v8 = vld [vmem:[%s3283_s1 + $0x78] sm:$0xff] }
  0xdc   :  { %v1798_v13 = vmax.f32 %v1749_v11, 0.0 }
  0xdd   :  { %v1156_v14 = vpop.f32.mrf.mxu2  ;;  %v1536_v15 = vpop.f32.mrf.mxu3 }
  0xde   :  { %v2565_v16 = vpack.c.bf16 %v1798_v13, %v1797_v12  ;;  %v349_v17 = vpop.f32.mrf.mxu0  ;;  %v729_v18 = vpop.f32.mrf.mxu1  ;;  %v1648_v20 = vmax.f32 %v1156_v14, %v1536_v15  ;;  %v2514_v13 = vld [vmem:[%s3284_s2 + $0x78] sm:$0xff] }
  0xdf   :  { %v840_v26 = vmax.f32 %v349_v17, %v729_v18  ;;  %v2538_v14 = vld [vmem:[%s3285_s3 + $0x78] sm:$0xff] }
  0xe0   :  { %2669 = vst [vmem:[%s3287_s6 + $0x18] sm:$0xff] %v2565_v16   ;;  %v1697_v21 = vmax.f32 %v839_v19, %v1648_v20 }
  0xe2   :  { %v1750_v32 = vadd.f32 %v2894_v56, %v1697_v21 }
  0xe4   :  { %v1799_v35 = vmax.f32 %v1750_v32, 0.0 }
  0xe5   :  { %v1158_v22 = vpop.f32.mrf.mxu2  ;;  %v1538_v23 = vpop.f32.mrf.mxu3 }
  0xe6   :  { %v1649_v27 = vmax.f32 %v1158_v22, %v1538_v23  ;;  %v352_v28 = vpop.f32.mrf.mxu0  ;;  %v732_v29 = vpop.f32.mrf.mxu1 }
  0xe7   :  { %v841_v42 = vmax.f32 %v352_v28, %v732_v29 }
  0xe8   :  { %v1698_v33 = vmax.f32 %v840_v26, %v1649_v27 }
  0xe9   :  { %2071 = vmatmul.msk.bf16.gmra.mxu0 %vm235_vm2, %v2464_v24  ;;  %2192 = vmatmul.msk.bf16.gmra.mxu1 %vm235_vm2, %v2488_v25 }
  0xea   :  { %v1751_v34 = vadd.f32 %v2894_v56, %v1698_v33  ;;  %2313 = vmatmul.msk.bf16.gmra.mxu2 %vm235_vm2, %v2512_v30  ;;  %2434 = vmatmul.msk.bf16.gmra.mxu3 %vm235_vm2, %v2536_v31  ;;  %v2467_v30 = vld [vmem:[%s3282_s0 + $0x80] sm:$0xff] }
  0xeb   :  { %v2491_v31 = vld [vmem:[%s3283_s1 + $0x80] sm:$0xff] }
  0xec   :  { %v1800_v36 = vmax.f32 %v1751_v34, 0.0 }
  0xed   :  { %v1161_v37 = vpop.f32.mrf.mxu2  ;;  %v1541_v38 = vpop.f32.mrf.mxu3 }
  0xee   :  { %v2570_v39 = vpack.c.bf16 %v1800_v36, %v1799_v35  ;;  %v354_v40 = vpop.f32.mrf.mxu0  ;;  %v734_v41 = vpop.f32.mrf.mxu1  ;;  %v1650_v43 = vmax.f32 %v1161_v37, %v1541_v38  ;;  %v2515_v36 = vld [vmem:[%s3284_s2 + $0x80] sm:$0xff] }
  0xef   :  { %v842_v49 = vmax.f32 %v354_v40, %v734_v41  ;;  %v2539_v37 = vld [vmem:[%s3285_s3 + $0x80] sm:$0xff] }
  0xf0   :  { %2670 = vst [vmem:[%s3287_s6 + $0x20] sm:$0xff] %v2570_v39   ;;  %v1699_v44 = vmax.f32 %v841_v42, %v1650_v43 }
  0xf2   :  { %v1752_v55 = vadd.f32 %v2894_v56, %v1699_v44 }
  0xf4   :  { %v1801_v59 = vmax.f32 %v1752_v55, 0.0 }
  0xf5   :  { %v1163_v45 = vpop.f32.mrf.mxu2  ;;  %v1543_v46 = vpop.f32.mrf.mxu3 }
  0xf6   :  { %v1651_v50 = vmax.f32 %v1163_v45, %v1543_v46  ;;  %v357_v51 = vpop.f32.mrf.mxu0  ;;  %v737_v52 = vpop.f32.mrf.mxu1 }
  0xf7   :  { %v843_v2 = vmax.f32 %v357_v51, %v737_v52 }
  0xf8   :  { %v1700_v57 = vmax.f32 %v842_v49, %v1651_v50 }
  0xf9   :  { %2072 = vmatmul.msk.bf16.gmra.mxu0 %vm235_vm2, %v2465_v47  ;;  %2193 = vmatmul.msk.bf16.gmra.mxu1 %vm235_vm2, %v2489_v48 }
  0xfa   :  { %v1753_v58 = vadd.f32 %v2894_v56, %v1700_v57  ;;  %2314 = vmatmul.msk.bf16.gmra.mxu2 %vm235_vm2, %v2513_v53  ;;  %2435 = vmatmul.msk.bf16.gmra.mxu3 %vm235_vm2, %v2537_v54  ;;  %v2468_v53 = vld [vmem:[%s3282_s0 + $0x88] sm:$0xff] }
  0xfb   :  { %v2492_v54 = vld [vmem:[%s3283_s1 + $0x88] sm:$0xff] }
  0xfc   :  { %v1802_v60 = vmax.f32 %v1753_v58, 0.0 }
  0xfd   :  { %v1166_v61 = vpop.f32.mrf.mxu2  ;;  %v1546_v62 = vpop.f32.mrf.mxu3 }
  0xfe   :  { %v2575_v63 = vpack.c.bf16 %v1802_v60, %v1801_v59  ;;  %v359_v0 = vpop.f32.mrf.mxu0  ;;  %v739_v1 = vpop.f32.mrf.mxu1  ;;  %v1652_v3 = vmax.f32 %v1166_v61, %v1546_v62  ;;  %v2516_v60 = vld [vmem:[%s3284_s2 + $0x88] sm:$0xff] }
  0xff   :  { %v844_v9 = vmax.f32 %v359_v0, %v739_v1  ;;  %v2540_v61 = vld [vmem:[%s3285_s3 + $0x88] sm:$0xff] }
 0x100   :  { %2671 = vst [vmem:[%s3287_s6 + $0x28] sm:$0xff] %v2575_v63   ;;  %v1701_v4 = vmax.f32 %v843_v2, %v1652_v3 }
 0x102   :  { %v1754_v15 = vadd.f32 %v2894_v56, %v1701_v4 }
 0x104   :  { %v1803_v18 = vmax.f32 %v1754_v15, 0.0 }
 0x105   :  { %v1168_v5 = vpop.f32.mrf.mxu2  ;;  %v1548_v6 = vpop.f32.mrf.mxu3 }
 0x106   :  { %v1653_v10 = vmax.f32 %v1168_v5, %v1548_v6  ;;  %v362_v11 = vpop.f32.mrf.mxu0  ;;  %v742_v12 = vpop.f32.mrf.mxu1 }
 0x107   :  { %v845_v25 = vmax.f32 %v362_v11, %v742_v12 }
 0x108   :  { %v1702_v16 = vmax.f32 %v844_v9, %v1653_v10 }
 0x109   :  { %2073 = vmatmul.msk.bf16.gmra.mxu0 %vm235_vm2, %v2466_v7  ;;  %2194 = vmatmul.msk.bf16.gmra.mxu1 %vm235_vm2, %v2490_v8 }
 0x10a   :  { %v1755_v17 = vadd.f32 %v2894_v56, %v1702_v16  ;;  %2315 = vmatmul.msk.bf16.gmra.mxu2 %vm235_vm2, %v2514_v13  ;;  %2436 = vmatmul.msk.bf16.gmra.mxu3 %vm235_vm2, %v2538_v14  ;;  %v2469_v13 = vld [vmem:[%s3282_s0 + $0x90] sm:$0xff] }
 0x10b   :  { %v2493_v14 = vld [vmem:[%s3283_s1 + $0x90] sm:$0xff] }
 0x10c   :  { %v1804_v19 = vmax.f32 %v1755_v17, 0.0 }
 0x10d   :  { %v1171_v20 = vpop.f32.mrf.mxu2  ;;  %v1551_v21 = vpop.f32.mrf.mxu3 }
 0x10e   :  { %v2580_v22 = vpack.c.bf16 %v1804_v19, %v1803_v18  ;;  %v364_v23 = vpop.f32.mrf.mxu0  ;;  %v744_v24 = vpop.f32.mrf.mxu1  ;;  %v1654_v26 = vmax.f32 %v1171_v20, %v1551_v21  ;;  %v2517_v19 = vld [vmem:[%s3284_s2 + $0x90] sm:$0xff] }
 0x10f   :  { %v846_v32 = vmax.f32 %v364_v23, %v744_v24  ;;  %v2541_v20 = vld [vmem:[%s3285_s3 + $0x90] sm:$0xff] }
 0x110   :  { %2672 = vst [vmem:[%s3287_s6 + $0x30] sm:$0xff] %v2580_v22   ;;  %v1703_v27 = vmax.f32 %v845_v25, %v1654_v26 }
 0x112   :  { %v1756_v38 = vadd.f32 %v2894_v56, %v1703_v27 }
 0x114   :  { %v1805_v41 = vmax.f32 %v1756_v38, 0.0 }
 0x115   :  { %v1173_v28 = vpop.f32.mrf.mxu2  ;;  %v1553_v29 = vpop.f32.mrf.mxu3 }
 0x116   :  { %v1655_v33 = vmax.f32 %v1173_v28, %v1553_v29  ;;  %v367_v34 = vpop.f32.mrf.mxu0  ;;  %v747_v35 = vpop.f32.mrf.mxu1 }
 0x117   :  { %v847_v48 = vmax.f32 %v367_v34, %v747_v35 }
 0x118   :  { %v1704_v39 = vmax.f32 %v846_v32, %v1655_v33 }
 0x119   :  { %2074 = vmatmul.msk.bf16.gmra.mxu0 %vm235_vm2, %v2467_v30  ;;  %2195 = vmatmul.msk.bf16.gmra.mxu1 %vm235_vm2, %v2491_v31 }
 0x11a   :  { %v1757_v40 = vadd.f32 %v2894_v56, %v1704_v39  ;;  %2316 = vmatmul.msk.bf16.gmra.mxu2 %vm235_vm2, %v2515_v36  ;;  %2437 = vmatmul.msk.bf16.gmra.mxu3 %vm235_vm2, %v2539_v37  ;;  %v2470_v36 = vld [vmem:[%s3282_s0 + $0x98] sm:$0xff] }
 0x11b   :  { %v2494_v37 = vld [vmem:[%s3283_s1 + $0x98] sm:$0xff] }
 0x11c   :  { %v1806_v42 = vmax.f32 %v1757_v40, 0.0 }
 0x11d   :  { %v1176_v43 = vpop.f32.mrf.mxu2  ;;  %v1556_v44 = vpop.f32.mrf.mxu3 }
 0x11e   :  { %v2585_v45 = vpack.c.bf16 %v1806_v42, %v1805_v41  ;;  %v369_v46 = vpop.f32.mrf.mxu0  ;;  %v749_v47 = vpop.f32.mrf.mxu1  ;;  %v1656_v49 = vmax.f32 %v1176_v43, %v1556_v44  ;;  %v2518_v42 = vld [vmem:[%s3284_s2 + $0x98] sm:$0xff] }
 0x11f   :  { %v848_v55 = vmax.f32 %v369_v46, %v749_v47  ;;  %v2542_v43 = vld [vmem:[%s3285_s3 + $0x98] sm:$0xff] }
 0x120   :  { %2673 = vst [vmem:[%s3287_s6 + $0x38] sm:$0xff] %v2585_v45   ;;  %v1705_v50 = vmax.f32 %v847_v48, %v1656_v49 }
 0x122   :  { %v1758_v62 = vadd.f32 %v2894_v56, %v1705_v50 }
 0x124   :  { %v1807_v1 = vmax.f32 %v1758_v62, 0.0 }
 0x125   :  { %v1178_v51 = vpop.f32.mrf.mxu2  ;;  %v1558_v52 = vpop.f32.mrf.mxu3 }
 0x126   :  { %v1657_v57 = vmax.f32 %v1178_v51, %v1558_v52  ;;  %v372_v58 = vpop.f32.mrf.mxu0  ;;  %v752_v59 = vpop.f32.mrf.mxu1 }
 0x127   :  { %v849_v8 = vmax.f32 %v372_v58, %v752_v59 }
 0x128   :  { %v1706_v63 = vmax.f32 %v848_v55, %v1657_v57 }
 0x129   :  { %2075 = vmatmul.msk.bf16.gmra.mxu0 %vm235_vm2, %v2468_v53  ;;  %2196 = vmatmul.msk.bf16.gmra.mxu1 %vm235_vm2, %v2492_v54 }
 0x12a   :  { %v1759_v0 = vadd.f32 %v2894_v56, %v1706_v63  ;;  %2317 = vmatmul.msk.bf16.gmra.mxu2 %vm235_vm2, %v2516_v60  ;;  %2438 = vmatmul.msk.bf16.gmra.mxu3 %vm235_vm2, %v2540_v61  ;;  %v2471_v60 = vld [vmem:[%s3282_s0 + $0xa0] sm:$0xff] }
 0x12b   :  { %v2495_v61 = vld [vmem:[%s3283_s1 + $0xa0] sm:$0xff] }
 0x12c   :  { %v1808_v2 = vmax.f32 %v1759_v0, 0.0 }
 0x12d   :  { %v1181_v3 = vpop.f32.mrf.mxu2  ;;  %v1561_v4 = vpop.f32.mrf.mxu3 }
 0x12e   :  { %v2590_v5 = vpack.c.bf16 %v1808_v2, %v1807_v1  ;;  %v374_v6 = vpop.f32.mrf.mxu0  ;;  %v754_v7 = vpop.f32.mrf.mxu1  ;;  %v1658_v9 = vmax.f32 %v1181_v3, %v1561_v4  ;;  %v2519_v2 = vld [vmem:[%s3284_s2 + $0xa0] sm:$0xff] }
 0x12f   :  { %v850_v15 = vmax.f32 %v374_v6, %v754_v7  ;;  %v2543_v3 = vld [vmem:[%s3285_s3 + $0xa0] sm:$0xff] }
 0x130   :  { %2674 = vst [vmem:[%s3287_s6 + $0x40] sm:$0xff] %v2590_v5   ;;  %v1707_v10 = vmax.f32 %v849_v8, %v1658_v9 }
 0x132   :  { %v1760_v21 = vadd.f32 %v2894_v56, %v1707_v10 }
 0x134   :  { %v1809_v24 = vmax.f32 %v1760_v21, 0.0 }
 0x135   :  { %v1183_v11 = vpop.f32.mrf.mxu2  ;;  %v1563_v12 = vpop.f32.mrf.mxu3 }
 0x136   :  { %v1659_v16 = vmax.f32 %v1183_v11, %v1563_v12  ;;  %v377_v17 = vpop.f32.mrf.mxu0  ;;  %v757_v18 = vpop.f32.mrf.mxu1 }
 0x137   :  { %v851_v31 = vmax.f32 %v377_v17, %v757_v18 }
 0x138   :  { %v1708_v22 = vmax.f32 %v850_v15, %v1659_v16 }
 0x139   :  { %2076 = vmatmul.msk.bf16.gmra.mxu0 %vm235_vm2, %v2469_v13  ;;  %2197 = vmatmul.msk.bf16.gmra.mxu1 %vm235_vm2, %v2493_v14 }
 0x13a   :  { %v1761_v23 = vadd.f32 %v2894_v56, %v1708_v22  ;;  %2318 = vmatmul.msk.bf16.gmra.mxu2 %vm235_vm2, %v2517_v19  ;;  %2439 = vmatmul.msk.bf16.gmra.mxu3 %vm235_vm2, %v2541_v20  ;;  %v2472_v19 = vld [vmem:[%s3282_s0 + $0xa8] sm:$0xff] }
 0x13b   :  { %v2496_v20 = vld [vmem:[%s3283_s1 + $0xa8] sm:$0xff] }
 0x13c   :  { %v1810_v25 = vmax.f32 %v1761_v23, 0.0 }
 0x13d   :  { %v1186_v26 = vpop.f32.mrf.mxu2  ;;  %v1566_v27 = vpop.f32.mrf.mxu3 }
 0x13e   :  { %v2595_v28 = vpack.c.bf16 %v1810_v25, %v1809_v24  ;;  %v379_v29 = vpop.f32.mrf.mxu0  ;;  %v759_v30 = vpop.f32.mrf.mxu1  ;;  %v1660_v32 = vmax.f32 %v1186_v26, %v1566_v27  ;;  %v2520_v25 = vld [vmem:[%s3284_s2 + $0xa8] sm:$0xff] }
 0x13f   :  { %v852_v38 = vmax.f32 %v379_v29, %v759_v30  ;;  %v2544_v26 = vld [vmem:[%s3285_s3 + $0xa8] sm:$0xff] }
 0x140   :  { %2675 = vst [vmem:[%s3287_s6 + $0x48] sm:$0xff] %v2595_v28   ;;  %v1709_v33 = vmax.f32 %v851_v31, %v1660_v32 }
 0x142   :  { %v1762_v44 = vadd.f32 %v2894_v56, %v1709_v33 }
 0x144   :  { %v1811_v47 = vmax.f32 %v1762_v44, 0.0 }
 0x145   :  { %v1188_v34 = vpop.f32.mrf.mxu2  ;;  %v1568_v35 = vpop.f32.mrf.mxu3 }
 0x146   :  { %v1661_v39 = vmax.f32 %v1188_v34, %v1568_v35  ;;  %v382_v40 = vpop.f32.mrf.mxu0  ;;  %v762_v41 = vpop.f32.mrf.mxu1 }
 0x147   :  { %v853_v54 = vmax.f32 %v382_v40, %v762_v41 }
 0x148   :  { %v1710_v45 = vmax.f32 %v852_v38, %v1661_v39 }
 0x149   :  { %2077 = vmatmul.msk.bf16.gmra.mxu0 %vm235_vm2, %v2470_v36  ;;  %2198 = vmatmul.msk.bf16.gmra.mxu1 %vm235_vm2, %v2494_v37 }
 0x14a   :  { %v1763_v46 = vadd.f32 %v2894_v56, %v1710_v45  ;;  %2319 = vmatmul.msk.bf16.gmra.mxu2 %vm235_vm2, %v2518_v42  ;;  %2440 = vmatmul.msk.bf16.gmra.mxu3 %vm235_vm2, %v2542_v43  ;;  %v2473_v42 = vld [vmem:[%s3282_s0 + $0xb0] sm:$0xff] }
 0x14b   :  { %v2497_v43 = vld [vmem:[%s3283_s1 + $0xb0] sm:$0xff] }
 0x14c   :  { %v1812_v48 = vmax.f32 %v1763_v46, 0.0 }
 0x14d   :  { %v1191_v49 = vpop.f32.mrf.mxu2  ;;  %v1571_v50 = vpop.f32.mrf.mxu3 }
 0x14e   :  { %v2600_v51 = vpack.c.bf16 %v1812_v48, %v1811_v47  ;;  %v384_v52 = vpop.f32.mrf.mxu0  ;;  %v764_v53 = vpop.f32.mrf.mxu1  ;;  %v1662_v55 = vmax.f32 %v1191_v49, %v1571_v50  ;;  %v2521_v48 = vld [vmem:[%s3284_s2 + $0xb0] sm:$0xff] }
 0x14f   :  { %v854_v62 = vmax.f32 %v384_v52, %v764_v53  ;;  %v2545_v49 = vld [vmem:[%s3285_s3 + $0xb0] sm:$0xff] }
 0x150   :  { %2676 = vst [vmem:[%s3287_s6 + $0x50] sm:$0xff] %v2600_v51   ;;  %v1711_v57 = vmax.f32 %v853_v54, %v1662_v55 }
 0x152   :  { %v1764_v4 = vadd.f32 %v2894_v56, %v1711_v57 }
 0x154   :  { %v1813_v7 = vmax.f32 %v1764_v4, 0.0 }
 0x155   :  { %v1193_v58 = vpop.f32.mrf.mxu2  ;;  %v1573_v59 = vpop.f32.mrf.mxu3 }
 0x156   :  { %v1663_v63 = vmax.f32 %v1193_v58, %v1573_v59  ;;  %v387_v0 = vpop.f32.mrf.mxu0  ;;  %v767_v1 = vpop.f32.mrf.mxu1 }
 0x157   :  { %v855_v14 = vmax.f32 %v387_v0, %v767_v1 }
 0x158   :  { %v1712_v5 = vmax.f32 %v854_v62, %v1663_v63 }
 0x159   :  { %2078 = vmatmul.msk.bf16.gmra.mxu0 %vm235_vm2, %v2471_v60  ;;  %2199 = vmatmul.msk.bf16.gmra.mxu1 %vm235_vm2, %v2495_v61 }
 0x15a   :  { %v1765_v6 = vadd.f32 %v2894_v56, %v1712_v5  ;;  %2320 = vmatmul.msk.bf16.gmra.mxu2 %vm235_vm2, %v2519_v2  ;;  %2441 = vmatmul.msk.bf16.gmra.mxu3 %vm235_vm2, %v2543_v3  ;;  %v2474_v2 = vld [vmem:[%s3282_s0 + $0xb8] sm:$0xff] }
 0x15b   :  { %v2498_v3 = vld [vmem:[%s3283_s1 + $0xb8] sm:$0xff] }
 0x15c   :  { %v1814_v8 = vmax.f32 %v1765_v6, 0.0 }
 0x15d   :  { %v1196_v9 = vpop.f32.mrf.mxu2  ;;  %v1576_v10 = vpop.f32.mrf.mxu3 }
 0x15e   :  { %v2605_v11 = vpack.c.bf16 %v1814_v8, %v1813_v7  ;;  %v389_v12 = vpop.f32.mrf.mxu0  ;;  %v769_v13 = vpop.f32.mrf.mxu1  ;;  %v1664_v15 = vmax.f32 %v1196_v9, %v1576_v10  ;;  %v2522_v8 = vld [vmem:[%s3284_s2 + $0xb8] sm:$0xff] }
 0x15f   :  { %v856_v21 = vmax.f32 %v389_v12, %v769_v13  ;;  %v2546_v9 = vld [vmem:[%s3285_s3 + $0xb8] sm:$0xff] }
 0x160   :  { %2677 = vst [vmem:[%s3287_s6 + $0x58] sm:$0xff] %v2605_v11   ;;  %v1713_v16 = vmax.f32 %v855_v14, %v1664_v15 }
 0x162   :  { %v1766_v27 = vadd.f32 %v2894_v56, %v1713_v16 }
 0x164   :  { %v1815_v30 = vmax.f32 %v1766_v27, 0.0 }
 0x165   :  { %v1198_v17 = vpop.f32.mrf.mxu2  ;;  %v1578_v18 = vpop.f32.mrf.mxu3 }
 0x166   :  { %v1665_v22 = vmax.f32 %v1198_v17, %v1578_v18  ;;  %v392_v23 = vpop.f32.mrf.mxu0  ;;  %v772_v24 = vpop.f32.mrf.mxu1 }
 0x167   :  { %v857_v37 = vmax.f32 %v392_v23, %v772_v24  ;;  %v1308_v23 = vld [vmem:[%s3285_s3 + $0xc0] sm:$0xf] }
 0x168   :  { %v1714_v28 = vmax.f32 %v856_v21, %v1665_v22  ;;  %v499_v21 = vld [vmem:[%s3283_s1 + $0xc0] sm:$0xf] }
 0x169   :  { %2079 = vmatmul.msk.bf16.gmra.mxu0 %vm235_vm2, %v2472_v19  ;;  %2200 = vmatmul.msk.bf16.gmra.mxu1 %vm235_vm2, %v2496_v20  ;;  %v82_v20 = vld [vmem:[%s3282_s0 + $0xc0] sm:$0xf]  ;;  %v597_v27 = vunpack.c.l.b16 %v499_v21 }
 0x16a   :  { %v1767_v29 = vadd.f32 %v2894_v56, %v1714_v28  ;;  %2321 = vmatmul.msk.bf16.gmra.mxu2 %vm235_vm2, %v2520_v25  ;;  %2442 = vmatmul.msk.bf16.gmra.mxu3 %vm235_vm2, %v2544_v26  ;;  %v928_v22 = vld [vmem:[%s3284_s2 + $0xc0] sm:$0xf]  ;;  %v180_v26 = vunpack.c.l.b16 %v82_v20 }
 0x16b   :  { %v1026_v28 = vunpack.c.l.b16 %v928_v22 }
 0x16c   :  { %v1816_v31 = vmax.f32 %v1767_v29, 0.0  ;;  %v1406_v29 = vunpack.c.l.b16 %v1308_v23 }
 0x16d   :  { %v1201_v32 = vpop.f32.mrf.mxu2  ;;  %v1581_v33 = vpop.f32.mrf.mxu3 }
 0x16e   :  { %v2610_v34 = vpack.c.bf16 %v1816_v31, %v1815_v30  ;;  %v394_v35 = vpop.f32.mrf.mxu0  ;;  %v774_v36 = vpop.f32.mrf.mxu1  ;;  %v1666_v38 = vmax.f32 %v1201_v32, %v1581_v33  ;;  %v205_v33 = vpack.c.b16 %v180_v26, %v180_v26 }
 0x16f   :  { %v858_v44 = vmax.f32 %v394_v35, %v774_v36 }
 0x170   :  { %2678 = vst [vmem:[%s3287_s6 + $0x60] sm:$0xff] %v2610_v34   ;;  %v1715_v39 = vmax.f32 %v857_v37, %v1666_v38  ;;  %v622_v34 = vpack.c.b16 %v597_v27, %v597_v27 }
 0x172   :  { %v1768_v50 = vadd.f32 %v2894_v56, %v1715_v39  ;;  %v1051_v39 = vpack.c.b16 %v1026_v28, %v1026_v28 }
 0x174   :  { %v1817_v53 = vmax.f32 %v1768_v50, 0.0 }
 0x175   :  { %v1203_v40 = vpop.f32.mrf.mxu2  ;;  %v1583_v41 = vpop.f32.mrf.mxu3 }
 0x176   :  { %v1667_v45 = vmax.f32 %v1203_v40, %v1583_v41  ;;  %v397_v46 = vpop.f32.mrf.mxu0  ;;  %v777_v47 = vpop.f32.mrf.mxu1  ;;  %v1431_v40 = vpack.c.b16 %v1406_v29, %v1406_v29 }
 0x177   :  { %v859_v61 = vmax.f32 %v397_v46, %v777_v47 }
 0x178   :  { %v1716_v51 = vmax.f32 %v858_v44, %v1667_v45 }
 0x179   :  { %2080 = vmatmul.msk.bf16.gmra.mxu0 %vm235_vm2, %v2473_v42  ;;  %2201 = vmatmul.msk.bf16.gmra.mxu1 %vm235_vm2, %v2497_v43 }
 0x17a   :  { %v1769_v52 = vadd.f32 %v2894_v56, %v1716_v51  ;;  %2322 = vmatmul.msk.bf16.gmra.mxu2 %vm235_vm2, %v2521_v48  ;;  %2443 = vmatmul.msk.bf16.gmra.mxu3 %vm235_vm2, %v2545_v49 }
 0x17c   :  { %v1818_v54 = vmax.f32 %v1769_v52, 0.0 }
 0x17d   :  { %v1206_v55 = vpop.f32.mrf.mxu2  ;;  %v1586_v57 = vpop.f32.mrf.mxu3 }
 0x17e   :  { %v2615_v58 = vpack.c.bf16 %v1818_v54, %v1817_v53  ;;  %v399_v59 = vpop.f32.mrf.mxu0  ;;  %v779_v60 = vpop.f32.mrf.mxu1  ;;  %v1668_v62 = vmax.f32 %v1206_v55, %v1586_v57 }
 0x17f   :  { %v860_v4 = vmax.f32 %v399_v59, %v779_v60 }
 0x180   :  { %2679 = vst [vmem:[%s3287_s6 + $0x68] sm:$0xff] %v2615_v58   ;;  %v1717_v63 = vmax.f32 %v859_v61, %v1668_v62 }
 0x182   :  { %v1770_v10 = vadd.f32 %v2894_v56, %v1717_v63 }
 0x184   :  { %v1819_v13 = vmax.f32 %v1770_v10, 0.0 }
 0x185   :  { %v1208_v0 = vpop.f32.mrf.mxu2  ;;  %v1588_v1 = vpop.f32.mrf.mxu3 }
 0x186   :  { %v1669_v5 = vmax.f32 %v1208_v0, %v1588_v1  ;;  %v402_v6 = vpop.f32.mrf.mxu0  ;;  %v782_v7 = vpop.f32.mrf.mxu1 }
 0x187   :  { %v861_v24 = vmax.f32 %v402_v6, %v782_v7 }
 0x188   :  { %v1718_v11 = vmax.f32 %v860_v4, %v1669_v5 }
 0x189   :  { %2081 = vmatmul.msk.bf16.gmra.mxu0 %vm235_vm2, %v2474_v2  ;;  %2202 = vmatmul.msk.bf16.gmra.mxu1 %vm235_vm2, %v2498_v3 }
 0x18a   :  { %v1771_v12 = vadd.f32 %v2894_v56, %v1718_v11  ;;  %2323 = vmatmul.msk.bf16.gmra.mxu2 %vm235_vm2, %v2522_v8  ;;  %2444 = vmatmul.msk.bf16.gmra.mxu3 %vm235_vm2, %v2546_v9 }
 0x18c   :  { %v1820_v14 = vmax.f32 %v1771_v12, 0.0 }
 0x18d   :  { %v1211_v15 = vpop.f32.mrf.mxu2  ;;  %v1591_v16 = vpop.f32.mrf.mxu3 }
 0x18e   :  { %v2620_v17 = vpack.c.bf16 %v1820_v14, %v1819_v13  ;;  %v404_v18 = vpop.f32.mrf.mxu0  ;;  %v784_v19 = vpop.f32.mrf.mxu1  ;;  %v1670_v25 = vmax.f32 %v1211_v15, %v1591_v16 }
 0x18f   :  { %v862_v35 = vmax.f32 %v404_v18, %v784_v19 }
 0x190   :  { %2680 = vst [vmem:[%s3287_s6 + $0x70] sm:$0xff] %v2620_v17   ;;  %v1719_v30 = vmax.f32 %v861_v24, %v1670_v25 }
 0x192   :  { %v1772_v41 = vadd.f32 %v2894_v56, %v1719_v30 }
 0x194   :  { %v1821_v44 = vmax.f32 %v1772_v41, 0.0 }
 0x195   :  { %v1213_v31 = vpop.f32.mrf.mxu2  ;;  %v1593_v32 = vpop.f32.mrf.mxu3 }
 0x196   :  { %v1671_v36 = vmax.f32 %v1213_v31, %v1593_v32  ;;  %v407_v37 = vpop.f32.mrf.mxu0  ;;  %v787_v38 = vpop.f32.mrf.mxu1 }
 0x197   :  { %v863_v51 = vmax.f32 %v407_v37, %v787_v38 }
 0x198   :  { %v1720_v42 = vmax.f32 %v862_v35, %v1671_v36 }
 0x199   :  { %2082 = vmatmul.msk.bf16.gmra.mxu0 %vm235_vm2, %v205_v33  ;;  %2203 = vmatmul.msk.bf16.gmra.mxu1 %vm235_vm2, %v622_v34 }
 0x19a   :  { %v1773_v43 = vadd.f32 %v2894_v56, %v1720_v42  ;;  %2324 = vmatmul.msk.bf16.gmra.mxu2 %vm235_vm2, %v1051_v39  ;;  %2445 = vmatmul.msk.bf16.gmra.mxu3 %vm235_vm2, %v1431_v40 }
 0x19c   :  { %v1822_v45 = vmax.f32 %v1773_v43, 0.0 }
 0x19d   :  { %v1216_v46 = vpop.f32.mrf.mxu2  ;;  %v1596_v47 = vpop.f32.mrf.mxu3 }
 0x19e   :  { %v2625_v48 = vpack.c.bf16 %v1822_v45, %v1821_v44  ;;  %v409_v49 = vpop.f32.mrf.mxu0  ;;  %v789_v50 = vpop.f32.mrf.mxu1  ;;  %v1672_v52 = vmax.f32 %v1216_v46, %v1596_v47 }
 0x19f   :  { %v864_v57 = vmax.f32 %v409_v49, %v789_v50 }
 0x1a0   :  { %2681 = vst [vmem:[%s3287_s6 + $0x78] sm:$0xff] %v2625_v48   ;;  %v1721_v53 = vmax.f32 %v863_v51, %v1672_v52 }
 0x1a2   :  { %v1774_v61 = vadd.f32 %v2894_v56, %v1721_v53  ;;  %v3250_v53 = vld [vmem:[%s3286_s5] ss:$0 sm:$0xff] }
 0x1a4   :  { %v1823_v0 = vmax.f32 %v1774_v61, 0.0 }
 0x1a5   :  { %v1218_v54 = vpop.f32.mrf.mxu2  ;;  %v1598_v55 = vpop.f32.mrf.mxu3 }
 0x1a6   :  { %v1673_v58 = vmax.f32 %v1218_v54, %v1598_v55  ;;  %v412_v59 = vpop.f32.mrf.mxu0  ;;  %v792_v60 = vpop.f32.mrf.mxu1 }
 0x1a7   :  { %v865_v7 = vmax.f32 %v412_v59, %v792_v60 }
 0x1a8   :  { %v1722_v62 = vmax.f32 %v864_v57, %v1673_v58 }
 0x1aa   :  { %v1775_v63 = vadd.f32 %v2894_v56, %v1722_v62 }
 0x1ac   :  { %v1824_v1 = vmax.f32 %v1775_v63, 0.0 }
 0x1ad   :  { %v1221_v2 = vpop.f32.mrf.mxu2  ;;  %v1601_v3 = vpop.f32.mrf.mxu3 }
 0x1ae   :  { %v2630_v4 = vpack.c.bf16 %v1824_v1, %v1823_v0  ;;  %v414_v5 = vpop.f32.mrf.mxu0  ;;  %v794_v6 = vpop.f32.mrf.mxu1  ;;  %v1674_v8 = vmax.f32 %v1221_v2, %v1601_v3 }
 0x1af   :  { %v866_v12 = vmax.f32 %v414_v5, %v794_v6 }
 0x1b0   :  { %2682 = vst [vmem:[%s3287_s6 + $0x80] sm:$0xff] %v2630_v4   ;;  %v1723_v9 = vmax.f32 %v865_v7, %v1674_v8 }
 0x1b2   :  { %v1776_v16 = vadd.f32 %v2894_v56, %v1723_v9 }
 0x1b4   :  { %v1825_v19 = vmax.f32 %v1776_v16, 0.0 }
 0x1b5   :  { %v1223_v10 = vpop.f32.mrf.mxu2  ;;  %v1603_v11 = vpop.f32.mrf.mxu3 }
 0x1b6   :  { %v1675_v13 = vmax.f32 %v1223_v10, %v1603_v11  ;;  %v417_v14 = vpop.f32.mrf.mxu0  ;;  %v797_v15 = vpop.f32.mrf.mxu1 }
 0x1b7   :  { %v867_v26 = vmax.f32 %v417_v14, %v797_v15 }
 0x1b8   :  { %v1724_v17 = vmax.f32 %v866_v12, %v1675_v13 }
 0x1ba   :  { %v1777_v18 = vadd.f32 %v2894_v56, %v1724_v17 }
 0x1bc   :  { %v1826_v20 = vmax.f32 %v1777_v18, 0.0 }
 0x1bd   :  { %v1226_v21 = vpop.f32.mrf.mxu2  ;;  %v1606_v22 = vpop.f32.mrf.mxu3 }
 0x1be   :  { %v2635_v23 = vpack.c.bf16 %v1826_v20, %v1825_v19  ;;  %v419_v24 = vpop.f32.mrf.mxu0  ;;  %v799_v25 = vpop.f32.mrf.mxu1  ;;  %v1676_v27 = vmax.f32 %v1226_v21, %v1606_v22 }
 0x1bf   :  { %v868_v31 = vmax.f32 %v419_v24, %v799_v25 }
 0x1c0   :  { %2683 = vst [vmem:[%s3287_s6 + $0x88] sm:$0xff] %v2635_v23   ;;  %v1725_v28 = vmax.f32 %v867_v26, %v1676_v27 }
 0x1c2   :  { %v1778_v35 = vadd.f32 %v2894_v56, %v1725_v28 }
 0x1c4   :  { %v1827_v38 = vmax.f32 %v1778_v35, 0.0 }
 0x1c5   :  { %v1228_v29 = vpop.f32.mrf.mxu2  ;;  %v1608_v30 = vpop.f32.mrf.mxu3 }
 0x1c6   :  { %v1677_v32 = vmax.f32 %v1228_v29, %v1608_v30  ;;  %v422_v33 = vpop.f32.mrf.mxu0  ;;  %v802_v34 = vpop.f32.mrf.mxu1 }
 0x1c7   :  { %v869_v45 = vmax.f32 %v422_v33, %v802_v34 }
 0x1c8   :  { %v1726_v36 = vmax.f32 %v868_v31, %v1677_v32 }
 0x1ca   :  { %v1779_v37 = vadd.f32 %v2894_v56, %v1726_v36 }
 0x1cc   :  { %v1828_v39 = vmax.f32 %v1779_v37, 0.0 }
 0x1cd   :  { %v1231_v40 = vpop.f32.mrf.mxu2  ;;  %v1611_v41 = vpop.f32.mrf.mxu3 }
 0x1ce   :  { %v2640_v42 = vpack.c.bf16 %v1828_v39, %v1827_v38  ;;  %v424_v43 = vpop.f32.mrf.mxu0  ;;  %v804_v44 = vpop.f32.mrf.mxu1  ;;  %v1678_v46 = vmax.f32 %v1231_v40, %v1611_v41 }
 0x1cf   :  { %v870_v50 = vmax.f32 %v424_v43, %v804_v44 }
 0x1d0   :  { %2684 = vst [vmem:[%s3287_s6 + $0x90] sm:$0xff] %v2640_v42   ;;  %v1727_v47 = vmax.f32 %v869_v45, %v1678_v46 }
 0x1d2   :  { %v1780_v54 = vadd.f32 %v3250_v53, %v1727_v47 }
 0x1d4   :  { %v1829_v58 = vmax.f32 %v1780_v54, 0.0 }
 0x1d5   :  { %v1233_v48 = vpop.f32.mrf.mxu2  ;;  %v1613_v49 = vpop.f32.mrf.mxu3 }
 0x1d6   :  { %v1679_v51 = vmax.f32 %v1233_v48, %v1613_v49  ;;  %v427_v52 = vpop.f32.mrf.mxu0  ;;  %v807_v56 = vpop.f32.mrf.mxu1 }
 0x1d7   :  { %v871_v1 = vmax.f32 %v427_v52, %v807_v56 }
 0x1d8   :  { %v1728_v55 = vmax.f32 %v870_v50, %v1679_v51 }
 0x1da   :  { %v1781_v57 = vadd.f32 %v3250_v53, %v1728_v55 }
 0x1dc   :  { %v1830_v59 = vmax.f32 %v1781_v57, 0.0 }
 0x1dd   :  { %v1236_v60 = vpop.f32.mrf.mxu2  ;;  %v1616_v61 = vpop.f32.mrf.mxu3 }
 0x1de   :  { %v2645_v62 = vpack.c.bf16 %v1830_v59, %v1829_v58  ;;  %v429_v63 = vpop.f32.mrf.mxu0  ;;  %v809_v0 = vpop.f32.mrf.mxu1  ;;  %v1680_v2 = vmax.f32 %v1236_v60, %v1616_v61 }
 0x1df   :  { %v872_v6 = vmax.f32 %v429_v63, %v809_v0 }
 0x1e0   :  { %2685 = vst [vmem:[%s3287_s6 + $0x98] sm:$0xff] %v2645_v62   ;;  %v1729_v3 = vmax.f32 %v871_v1, %v1680_v2 }
 0x1e2   :  { %v1782_v10 = vadd.f32 %v3250_v53, %v1729_v3 }
 0x1e4   :  { %v1831_v13 = vmax.f32 %v1782_v10, 0.0 }
 0x1e5   :  { %v1238_v4 = vpop.f32.mrf.mxu2  ;;  %v1618_v5 = vpop.f32.mrf.mxu3 }
 0x1e6   :  { %v1681_v7 = vmax.f32 %v1238_v4, %v1618_v5  ;;  %v432_v8 = vpop.f32.mrf.mxu0  ;;  %v812_v9 = vpop.f32.mrf.mxu1 }
 0x1e7   :  { %v873_v20 = vmax.f32 %v432_v8, %v812_v9 }
 0x1e8   :  { %v1730_v11 = vmax.f32 %v872_v6, %v1681_v7 }
 0x1ea   :  { %v1783_v12 = vadd.f32 %v3250_v53, %v1730_v11 }
 0x1ec   :  { %v1832_v14 = vmax.f32 %v1783_v12, 0.0 }
 0x1ed   :  { %v1241_v15 = vpop.f32.mrf.mxu2  ;;  %v1621_v16 = vpop.f32.mrf.mxu3 }
 0x1ee   :  { %v2650_v17 = vpack.c.bf16 %v1832_v14, %v1831_v13  ;;  %v434_v18 = vpop.f32.mrf.mxu0  ;;  %v814_v19 = vpop.f32.mrf.mxu1  ;;  %v1682_v21 = vmax.f32 %v1241_v15, %v1621_v16 }
 0x1ef   :  { %v874_v25 = vmax.f32 %v434_v18, %v814_v19 }
 0x1f0   :  { %2686 = vst [vmem:[%s3287_s6 + $0xa0] sm:$0xff] %v2650_v17   ;;  %v1731_v22 = vmax.f32 %v873_v20, %v1682_v21 }
 0x1f2   :  { %v1784_v29 = vadd.f32 %v3250_v53, %v1731_v22 }
 0x1f4   :  { %v1833_v32 = vmax.f32 %v1784_v29, 0.0 }
 0x1f5   :  { %v1243_v23 = vpop.f32.mrf.mxu2  ;;  %v1623_v24 = vpop.f32.mrf.mxu3 }
 0x1f6   :  { %v1683_v26 = vmax.f32 %v1243_v23, %v1623_v24  ;;  %v437_v27 = vpop.f32.mrf.mxu0  ;;  %v817_v28 = vpop.f32.mrf.mxu1 }
 0x1f7   :  { %v875_v39 = vmax.f32 %v437_v27, %v817_v28 }
 0x1f8   :  { %v1732_v30 = vmax.f32 %v874_v25, %v1683_v26 }
 0x1fa   :  { %v1785_v31 = vadd.f32 %v3250_v53, %v1732_v30 }
 0x1fc   :  { %v1834_v33 = vmax.f32 %v1785_v31, 0.0 }
 0x1fd   :  { %v1246_v34 = vpop.f32.mrf.mxu2  ;;  %v1626_v35 = vpop.f32.mrf.mxu3 }
 0x1fe   :  { %v2655_v36 = vpack.c.bf16 %v1834_v33, %v1833_v32  ;;  %v439_v37 = vpop.f32.mrf.mxu0  ;;  %v819_v38 = vpop.f32.mrf.mxu1  ;;  %v1684_v40 = vmax.f32 %v1246_v34, %v1626_v35 }
 0x1ff   :  { %v876_v44 = vmax.f32 %v439_v37, %v819_v38 }
 0x200   :  { %2687 = vst [vmem:[%s3287_s6 + $0xa8] sm:$0xff] %v2655_v36   ;;  %v1733_v41 = vmax.f32 %v875_v39, %v1684_v40 }
 0x202   :  { %v1786_v48 = vadd.f32 %v3250_v53, %v1733_v41 }
 0x204   :  { %v1835_v51 = vmax.f32 %v1786_v48, 0.0 }
 0x205   :  { %v1248_v42 = vpop.f32.mrf.mxu2  ;;  %v1628_v43 = vpop.f32.mrf.mxu3 }
 0x206   :  { %v1685_v45 = vmax.f32 %v1248_v42, %v1628_v43  ;;  %v442_v46 = vpop.f32.mrf.mxu0  ;;  %v822_v47 = vpop.f32.mrf.mxu1 }
 0x207   :  { %v877_v59 = vmax.f32 %v442_v46, %v822_v47 }
 0x208   :  { %v1734_v49 = vmax.f32 %v876_v44, %v1685_v45 }
 0x20a   :  { %v1787_v50 = vadd.f32 %v3250_v53, %v1734_v49 }
 0x20c   :  { %v1836_v52 = vmax.f32 %v1787_v50, 0.0 }
 0x20d   :  { %v1251_v56 = vpop.f32.mrf.mxu2  ;;  %v1631_v54 = vpop.f32.mrf.mxu3 }
 0x20e   :  { %v2660_v55 = vpack.c.bf16 %v1836_v52, %v1835_v51  ;;  %v444_v57 = vpop.f32.mrf.mxu0  ;;  %v824_v58 = vpop.f32.mrf.mxu1  ;;  %v1686_v60 = vmax.f32 %v1251_v56, %v1631_v54 }
 0x20f   :  { %v878_v0 = vmax.f32 %v444_v57, %v824_v58 }
 0x210   :  { %2688 = vst [vmem:[%s3287_s6 + $0xb0] sm:$0xff] %v2660_v55   ;;  %v1735_v61 = vmax.f32 %v877_v59, %v1686_v60 }
 0x212   :  { %v1788_v4 = vadd.f32 %v3250_v53, %v1735_v61 }
 0x214   :  { %v1837_v7 = vmax.f32 %v1788_v4, 0.0 }
 0x215   :  { %v1253_v62 = vpop.f32.mrf.mxu2  ;;  %v1633_v63 = vpop.f32.mrf.mxu3 }
 0x216   :  { %v1687_v1 = vmax.f32 %v1253_v62, %v1633_v63  ;;  %v447_v2 = vpop.f32.mrf.mxu0  ;;  %v827_v3 = vpop.f32.mrf.mxu1 }
 0x217   :  { %v879_v9 = vmax.f32 %v447_v2, %v827_v3 }
 0x218   :  { %v1736_v5 = vmax.f32 %v878_v0, %v1687_v1 }
 0x21a   :  { %v1789_v6 = vadd.f32 %v3250_v53, %v1736_v5 }
 0x21c   :  { %v1838_v8 = vmax.f32 %v1789_v6, 0.0 }
 0x21d   :  { %v1256_v10 = vpop.f32.mrf.mxu2  ;;  %v1636_v11 = vpop.f32.mrf.mxu3 }
 0x21e   :  { %v2665_v12 = vpack.c.bf16 %v1838_v8, %v1837_v7  ;;  %v1688_v13 = vmax.f32 %v1256_v10, %v1636_v11  ;;  %v449_v14 = vpop.f32.mrf.mxu0  ;;  %v829_v15 = vpop.f32.mrf.mxu1 }
 0x220   :  { %2689 = vst [vmem:[%s3287_s6 + $0xb8] sm:$0xff] %v2665_v12   ;;  %v1737_v16 = vmax.f32 %v879_v9, %v1688_v13 }
 0x222   :  { %v1790_v17 = vadd.f32 %v3250_v53, %v1737_v16 }
 0x224   :  { %v1839_v18 = vmax.f32 %v1790_v17, 0.0 }
 0x225   :  { %v1258_v19 = vpop.f32.mrf.mxu2  ;;  %v1638_v20 = vpop.f32.mrf.mxu3 }
 0x226   :  { %v1888_v21 = vpack.c.bf16 %v1839_v18, %v1839_v18 }
 0x228   :  { %1937 = vst [vmem:[%s3287_s6 + $0xc0] sm:$0xf] %v1888_v21 }

// kernel: the_model_forward.5
= control target key start
LH: loop header
LB: loop body
LE: loop exit
PB: predicated region body
PF: predicated region fallthrough
CT: control target
= control target key end

     0   :  { %vm246_vm0 = vcmask 130048   ;;  %s863_s1 = inlined_call_operand.vmem [shape: bf16[400,128], index: 1, kind: input, shape index: {}]   ;;  %s864_s0 = inlined_call_operand.vmem [shape: bf16[8,400], index: 0, kind: input, shape index: {}]   ;;  %s865_s3 = inlined_call_operand.vmem [shape: bf16[128,128], index: 3, kind: input, shape index: {}]   ;;  %s866_s2 = inlined_call_operand.vmem [shape: f32[1,128], index: 2, kind: input, shape index: {}]   ;;  %s867_s4 = inlined_call_operand.vmem [shape: f32[1,128], index: 4, kind: input, shape index: {}]   ;;  %s868_s5 = inlined_call_operand.vmem [shape: bf16[128,128], index: 5, kind: input, shape index: {}]   ;;  %s869_s6 = inlined_call_operand.vmem [shape: f32[1,128], index: 6, kind: input, shape index: {}]   ;;  %s870_s7 = inlined_call_operand.vmem [shape: f32[8,128], index: 7, kind: output, shape index: {}]  }
   0x1   :  { %v645_v0 = vld [vmem:[%s863_s1 + $0x38] sm:$0xff]  ;;  %v644_v3 = vld [vmem:[%s863_s1 + $0x30] sm:$0xff]  ;;  %v643_v6 = vld [vmem:[%s863_s1 + $0x28] sm:$0xff] }
   0x2   :  { %v653_v1 = vld [vmem:[%s863_s1 + $0x78] sm:$0xff]  ;;  %250 = vmatpush.bf16.msra.mxu0 %v645_v0  ;;  %v652_v4 = vld [vmem:[%s863_s1 + $0x70] sm:$0xff]  ;;  %v651_v7 = vld [vmem:[%s863_s1 + $0x68] sm:$0xff] }
   0x3   :  { %v661_v2 = vld [vmem:[%s863_s1 + $0xb8] sm:$0xff]  ;;  %263 = vmatpush.bf16.msra.mxu1 %v653_v1  ;;  %v660_v5 = vld [vmem:[%s863_s1 + $0xb0] sm:$0xff]  ;;  %v662_v8 = vld [vmem:[%s863_s1 + $0xc0] sm:$0xff] }
   0x4   :  { %276 = vmatpush.bf16.msra.mxu2 %v661_v2  ;;  %v659_v9 = vld [vmem:[%s863_s1 + $0xa8] sm:$0xff]  ;;  %296 = vmatpush.bf16.msra.mxu3 %v662_v8  ;;  %v670_v12 = vld [vmem:[%s865_s3 + $0x38] sm:$0xff]  ;;  %v642_v13 = vld [vmem:[%s863_s1 + $0x20] sm:$0xff] }
   0x5   :  { %v28_v10 = vld [vmem:[%s864_s0 + $0x8] sm:$0xff]  ;;  %v650_v14 = vld [vmem:[%s863_s1 + $0x60] sm:$0xff]  ;;  %v669_v17 = vld [vmem:[%s865_s3 + $0x30] sm:$0xff] }
   0x6   :  { %251 = vmatpush.bf16.msra.mxu0 %v644_v3  ;;  %v88_v11 = vunpack.c.h.b16 %v28_v10  ;;  %v658_v16 = vld [vmem:[%s863_s1 + $0xa0] sm:$0xff]  ;;  %v641_v18 = vld [vmem:[%s863_s1 + $0x18] sm:$0xff]  ;;  %v668_v21 = vld [vmem:[%s865_s3 + $0x28] sm:$0xff]  ;;  %v87_v34 = vunpack.c.l.b16 %v28_v10 }
   0x7   :  { %264 = vmatpush.bf16.msra.mxu1 %v652_v4  ;;  %v649_v19 = vld [vmem:[%s863_s1 + $0x58] sm:$0xff]  ;;  %v640_v22 = vld [vmem:[%s863_s1 + $0x10] sm:$0xff]  ;;  %v667_v25 = vld [vmem:[%s865_s3 + $0x20] sm:$0xff] }
   0x8   :  { %277 = vmatpush.bf16.msra.mxu2 %v660_v5  ;;  %v92_v15 = vpack.c.b16 %v88_v11, %v88_v11  ;;  %372 = vmatpush.bf16.msrb.mxu3 %v670_v12  ;;  %v657_v20 = vld [vmem:[%s863_s1 + $0x98] sm:$0xff]  ;;  %v648_v23 = vld [vmem:[%s863_s1 + $0x50] sm:$0xff]  ;;  %v639_v26 = vld [vmem:[%s863_s1 + $0x8] sm:$0xff]  ;;  %v91_v38 = vpack.c.b16 %v87_v34, %v87_v34 }
   0x9   :  { %v656_v24 = vld [vmem:[%s863_s1 + $0x90] sm:$0xff]  ;;  %v647_v27 = vld [vmem:[%s863_s1 + $0x48] sm:$0xff]  ;;  %v27_v28 = vld [vmem:[%s864_s0] sm:$0xff] }
   0xa   :  { %252 = vmatpush.bf16.msra.mxu0 %v643_v6  ;;  %573 = vmatmul.msk.bf16.vlgmr.msra.gmra.mxu3 %vm246_vm0, %v92_v15  ;;  %v655_v29 = vld [vmem:[%s863_s1 + $0x88] sm:$0xff]  ;;  %v85_v30 = vunpack.c.l.b16 %v27_v28  ;;  %v86_v31 = vunpack.c.h.b16 %v27_v28  ;;  %v638_v32 = vld [vmem:[%s863_s1] sm:$0xff]  ;;  %v666_v39 = vld [vmem:[%s865_s3 + $0x18] sm:$0xff] }
   0xb   :  { %265 = vmatpush.bf16.msra.mxu1 %v651_v7  ;;  %v646_v33 = vld [vmem:[%s863_s1 + $0x40] sm:$0xff]  ;;  %v665_v40 = vld [vmem:[%s865_s3 + $0x10] sm:$0xff]  ;;  %v664_v41 = vld [vmem:[%s865_s3 + $0x8] sm:$0xff] }
   0xc   :  { %278 = vmatpush.bf16.msra.mxu2 %v659_v9  ;;  %373 = vmatpush.bf16.msrb.mxu3 %v669_v17  ;;  %v654_v35 = vld [vmem:[%s863_s1 + $0x80] sm:$0xff]  ;;  %v89_v36 = vpack.c.b16 %v85_v30, %v85_v30  ;;  %v90_v37 = vpack.c.b16 %v86_v31, %v86_v31  ;;  %v678_v43 = vld [vmem:[%s868_s5 + $0x38] sm:$0xff]  ;;  %v677_v45 = vld [vmem:[%s868_s5 + $0x30] sm:$0xff] }
   0xd   :  { %v663_v42 = vld [vmem:[%s865_s3] sm:$0xff]  ;;  %v676_v46 = vld [vmem:[%s868_s5 + $0x28] sm:$0xff]  ;;  %v674_v50 = vld [vmem:[%s868_s5 + $0x18] sm:$0xff] }
   0xe   :  { %253 = vmatpush.bf16.msra.mxu0 %v642_v13  ;;  %v675_v48 = vld [vmem:[%s868_s5 + $0x20] sm:$0xff]  ;;  %v673_v54 = vld [vmem:[%s868_s5 + $0x10] sm:$0xff]  ;;  %v672_v0 = vld [vmem:[%s868_s5 + $0x8] sm:$0xff] }
   0xf   :  { %266 = vmatpush.bf16.msra.mxu1 %v650_v14  ;;  %v679_v49 = vld [vmem:[%s866_s2] ss:$0 sm:$0xff] }
  0x10   :  { %279 = vmatpush.bf16.msra.mxu2 %v658_v16  ;;  %374 = vmatpush.bf16.msrb.mxu3 %v668_v21  ;;  %v671_v1 = vld [vmem:[%s868_s5] sm:$0xff] }
  0x11   :  { %v680_v2 = vld [vmem:[%s867_s4] ss:$0 sm:$0xff] }
  0x12   :  { %254 = vmatpush.bf16.msra.mxu0 %v641_v18  ;;  %v681_v8 = vld [vmem:[%s869_s6] ss:$0 sm:$0xff] }
  0x13   :  { %267 = vmatpush.bf16.msra.mxu1 %v649_v19 }
  0x14   :  { %280 = vmatpush.bf16.msra.mxu2 %v657_v20  ;;  %375 = vmatpush.bf16.msrb.mxu3 %v667_v25 }
  0x16   :  { %255 = vmatpush.bf16.msra.mxu0 %v640_v22 }
  0x17   :  { %268 = vmatpush.bf16.msra.mxu1 %v648_v23 }
  0x18   :  { %281 = vmatpush.bf16.msra.mxu2 %v656_v24  ;;  %376 = vmatpush.bf16.msrb.mxu3 %v666_v39 }
  0x1a   :  { %256 = vmatpush.bf16.msra.mxu0 %v639_v26 }
  0x1b   :  { %269 = vmatpush.bf16.msra.mxu1 %v647_v27 }
  0x1c   :  { %282 = vmatpush.bf16.msra.mxu2 %v655_v29  ;;  %377 = vmatpush.bf16.msrb.mxu3 %v665_v40 }
  0x1e   :  { %257 = vmatpush.bf16.msra.mxu0 %v638_v32 }
  0x1f   :  { %270 = vmatpush.bf16.msra.mxu1 %v646_v33 }
  0x20   :  { %283 = vmatpush.bf16.msra.mxu2 %v654_v35  ;;  %378 = vmatpush.bf16.msrb.mxu3 %v664_v41 }
  0x21   :  { %258 = vmatmul.bf16.vlgmr.msra.gmra.mxu0 %v89_v36 }
  0x22   :  { %271 = vmatmul.bf16.vlgmr.msra.gmra.mxu1 %v90_v37  ;;  %455 = vmatpush.bf16.msrb.mxu0 %v678_v43 }
  0x23   :  { %284 = vmatmul.bf16.vlgmr.msra.gmra.mxu2 %v91_v38 }
  0x24   :  { %379 = vmatpush.bf16.msrb.mxu3 %v663_v42 }
  0x26   :  { %456 = vmatpush.bf16.msrb.mxu0 %v677_v45 }
  0x2a   :  { %457 = vmatpush.bf16.msrb.mxu0 %v676_v46 }
  0x2e   :  { %458 = vmatpush.bf16.msrb.mxu0 %v675_v48 }
  0x32   :  { %459 = vmatpush.bf16.msrb.mxu0 %v674_v50 }
  0x36   :  { %460 = vmatpush.bf16.msrb.mxu0 %v673_v54 }
  0x3a   :  { %461 = vmatpush.bf16.msrb.mxu0 %v672_v0 }
  0x3e   :  { %462 = vmatpush.bf16.msrb.mxu0 %v671_v1 }
  0x8d   :  { %v298_v44 = vpop.f32.mrf.mxu3 }
  0x95   :  { %v300_v47 = vpop.f32.mrf.mxu3 }
  0x9e   :  { %v259_v51 = vpop.f32.mrf.mxu0 }
  0x9f   :  { %v272_v52 = vpop.f32.mrf.mxu1  ;;  %v260_v53 = vadd.f32 %v679_v49, %v259_v51 }
  0xa1   :  { %v273_v55 = vadd.f32 %v272_v52, %v260_v53 }
  0xa6   :  { %v285_v56 = vpop.f32.mrf.mxu2  ;;  %v261_v58 = vpop.f32.mrf.mxu0 }
  0xa7   :  { %v286_v57 = vadd.f32 %v285_v56, %v273_v55  ;;  %v274_v59 = vpop.f32.mrf.mxu1 }
  0xa9   :  { %v299_v60 = vadd.f32 %v298_v44, %v286_v57 }
  0xab   :  { %v302_v61 = vmax.f32 %v299_v60, 0.0 }
  0xad   :  { %v303_v62 = vpack.c.bf16 %v302_v61, %v302_v61 }
  0xae   :  { %v287_v63 = vpop.f32.mrf.mxu2 }
  0xaf   :  { %380 = vmatmul.bf16.vlgmr.msrb.gmra.mxu3 %v303_v62 }
 0x132   :  { %v381_v3 = vpop.f32.mrf.mxu3 }
 0x133   :  { %v382_v4 = vadd.f32 %v680_v2, %v381_v3 }
 0x135   :  { %v385_v5 = vmax.f32 %v382_v4, 0.0 }
 0x137   :  { %v386_v6 = vpack.c.bf16 %v385_v5, %v385_v5 }
 0x139   :  { %463 = vmatmul.bf16.vlgmr.msrb.gmra.mxu0 %v386_v6 }
 0x13a   :  { %v383_v7 = vpop.f32.mrf.mxu3 }
 0x1b6   :  { %v464_v9 = vpop.f32.mrf.mxu0 }
 0x1b7   :  { %v465_v10 = vadd.f32 %v681_v8, %v464_v9 }
 0x1b9   :  { %468 = vst [vmem:[%s870_s7] sm:$0xff] %v465_v10 }
 0x1be   :  { %v466_v11 = vpop.f32.mrf.mxu0 }

// kernel: the_model_forward.4
= control target key start
LH: loop header
LB: loop body
LE: loop exit
PB: predicated region body
PF: predicated region fallthrough
CT: control target
= control target key end

     0   :  { %vm153_vm0 = vcmask 1042432   ;;  %vm140_vm1 = vcmask 179200   ;;  %s1108_s4 = inlined_call_operand.vmem [shape: bf16[150,128], index: 4, kind: input, shape index: {}]   ;;  %s1109_s1 = inlined_call_operand.vmem [shape: bf16[56,150], index: 1, kind: input, shape index: {}]   ;;  %s1110_s0 = inlined_call_operand.vmem [shape: bf16[56,150], index: 0, kind: input, shape index: {}]   ;;  %s1111_s2 = inlined_call_operand.vmem [shape: bf16[56,150], index: 2, kind: input, shape index: {}]   ;;  %s1112_s3 = inlined_call_operand.vmem [shape: bf16[56,150], index: 3, kind: input, shape index: {}]   ;;  %s1113_s5 = inlined_call_operand.vmem [shape: f32[1,128], index: 5, kind: input, shape index: {}]   ;;  %s1114_s6 = inlined_call_operand.vmem [shape: bf16[56,128], index: 6, kind: output, shape index: {}]  }
   0x1   :  { %v831_v0 = vld [vmem:[%s1108_s4 + $0x38] sm:$0xff]  ;;  %v42_v1 = vld [vmem:[%s1108_s4 + $0x48] sm:$0x7]  ;;  %v841_v2 = vld [vmem:[%s1108_s4 + $0x30] sm:$0xff] }
   0x2   :  { %157 = vmatpush.bf16.msra.mxu0 %v831_v0  ;;  %265 = vmatpush.bf16.msra.mxu2 %v831_v0  ;;  %v120_v3 = vunpack.c.l.b16 %v42_v1  ;;  %v747_v5 = vld [vmem:[%s1108_s4 + $0x28] sm:$0xff]  ;;  %v750_v7 = vld [vmem:[%s1108_s4 + $0x40] sm:$0xff]  ;;  %v745_v15 = vld [vmem:[%s1108_s4 + $0x18] sm:$0xff] }
   0x3   :  { %v757_v8 = vld [vmem:[%s1109_s1 + $0x4] sm:$0xf]  ;;  %v662_v9 = vld [vmem:[%s1109_s1 + $0x8] sm:$0xf0]  ;;  %v744_v16 = vld [vmem:[%s1108_s4 + $0x10] sm:$0xff] }
   0x4   :  { %v130_v4 = vpack.c.b16 %v120_v3, %v120_v3  ;;  %v751_v10 = vld [vmem:[%s1110_s0 + $0x4] sm:$0xf]  ;;  %v598_v11 = vld [vmem:[%s1110_s0 + $0x8] sm:$0xf0]  ;;  %v665_v13 = vor.u32 %v757_v8, %v662_v9  ;;  %v596_v19 = vld [vmem:[%s1110_s0] sm:$0xf] }
   0x5   :  { %v746_v12 = vld [vmem:[%s1108_s4 + $0x20] sm:$0xff]  ;;  %v601_v14 = vor.u32 %v751_v10, %v598_v11  ;;  %v743_v17 = vld [vmem:[%s1108_s4 + $0x8] sm:$0xff]  ;;  %v759_v20 = vld [vmem:[%s1109_s1 + $0x14] sm:$0xf] }
   0x6   :  { %158 = vmatpush.bf16.msra.mxu0 %v841_v2  ;;  %266 = vmatpush.bf16.msra.mxu2 %v841_v2  ;;  %v155_v6 = vsel %vm153_vm0, %v130_v4, 0  ;;  %v742_v18 = vld [vmem:[%s1108_s4] sm:$0xff]  ;;  %v670_v21 = vld [vmem:[%s1109_s1 + $0x18] sm:$0xf0]  ;;  %v753_v22 = vld [vmem:[%s1110_s0 + $0x14] sm:$0xf] }
   0x7   :  { %299 = vmatpush.bf16.msra.mxu3 %v155_v6  ;;  %191 = vmatpush.bf16.msra.mxu1 %v155_v6  ;;  %v606_v23 = vld [vmem:[%s1110_s0 + $0x18] sm:$0xf0]  ;;  %v752_v24 = vld [vmem:[%s1110_s0 + $0x4] sm:$0xf0]  ;;  %v660_v25 = vld [vmem:[%s1109_s1] sm:$0xf]  ;;  %v673_v27 = vor.u32 %v759_v20, %v670_v21 }
   0x8   :  { %v758_v26 = vld [vmem:[%s1109_s1 + $0x4] sm:$0xf0]  ;;  %v609_v28 = vor.u32 %v753_v22, %v606_v23  ;;  %v597_v29 = vor.u32 %v752_v24, %v596_v19  ;;  %v604_v31 = vld [vmem:[%s1110_s0 + $0x10] sm:$0xf]  ;;  %v761_v32 = vld [vmem:[%s1109_s1 + $0x24] sm:$0xf] }
   0x9   :  { %v661_v30 = vor.u32 %v758_v26, %v660_v25  ;;  %v678_v33 = vld [vmem:[%s1109_s1 + $0x28] sm:$0xf0]  ;;  %v755_v34 = vld [vmem:[%s1110_s0 + $0x24] sm:$0xf]  ;;  %v754_v36 = vld [vmem:[%s1110_s0 + $0x14] sm:$0xf0] }
   0xa   :  { %159 = vmatpush.bf16.msra.mxu0 %v747_v5  ;;  %267 = vmatpush.bf16.msra.mxu2 %v747_v5  ;;  %v614_v35 = vld [vmem:[%s1110_s0 + $0x28] sm:$0xf0]  ;;  %v668_v37 = vld [vmem:[%s1109_s1 + $0x10] sm:$0xf]  ;;  %v760_v38 = vld [vmem:[%s1109_s1 + $0x14] sm:$0xf0]  ;;  %v681_v39 = vor.u32 %v761_v32, %v678_v33  ;;  %v605_v41 = vor.u32 %v754_v36, %v604_v31 }
   0xb   :  { %300 = vmatpush.bf16.msra.mxu3 %v750_v7  ;;  %192 = vmatpush.bf16.msra.mxu1 %v750_v7  ;;  %v617_v40 = vor.u32 %v755_v34, %v614_v35  ;;  %v669_v42 = vor.u32 %v760_v38, %v668_v37  ;;  %v219_v43 = vld [vmem:[%s1109_s1 + $0x30] sm:$0xff]  ;;  %v612_v47 = vld [vmem:[%s1110_s0 + $0x20] sm:$0xf]  ;;  %v756_v48 = vld [vmem:[%s1110_s0 + $0x24] sm:$0xf0] }
   0xc   :  { %v49_v44 = vld [vmem:[%s1110_s0 + $0x30] sm:$0xff]  ;;  %v240_v45 = vunpack.c.h.b16 %v219_v43  ;;  %v676_v49 = vld [vmem:[%s1109_s1 + $0x20] sm:$0xf]  ;;  %v762_v50 = vld [vmem:[%s1109_s1 + $0x24] sm:$0xf0]  ;;  %v613_v53 = vor.u32 %v756_v48, %v612_v47  ;;  %v239_v57 = vunpack.c.l.b16 %v219_v43 }
   0xd   :  { %v70_v46 = vunpack.c.h.b16 %v49_v44  ;;  %v677_v54 = vor.u32 %v762_v50, %v676_v49  ;;  %v763_v55 = vld [vmem:[%s1111_s2 + $0x4] sm:$0xf]  ;;  %v69_v56 = vunpack.c.l.b16 %v49_v44  ;;  %v690_v58 = vld [vmem:[%s1111_s2 + $0x8] sm:$0xf0]  ;;  %v688_v59 = vld [vmem:[%s1111_s2] sm:$0xf] }
   0xe   :  { %160 = vmatpush.bf16.msra.mxu0 %v746_v12  ;;  %268 = vmatpush.bf16.msra.mxu2 %v746_v12  ;;  %v248_v51 = vpack.c.b16 %v240_v45, %v240_v45  ;;  %v764_v60 = vld [vmem:[%s1111_s2 + $0x4] sm:$0xf0]  ;;  %v693_v61 = vor.u32 %v763_v55, %v690_v58  ;;  %v716_v1 = vld [vmem:[%s1112_s3] sm:$0xf]  ;;  %v698_v3 = vld [vmem:[%s1111_s2 + $0x18] sm:$0xf0] }
   0xf   :  { %414 = vmatpush.bf16.msrb.mxu3 %v155_v6  ;;  %380 = vmatpush.bf16.msrb.mxu1 %v831_v0  ;;  %v78_v52 = vpack.c.b16 %v70_v46, %v70_v46  ;;  %v689_v62 = vor.u32 %v764_v60, %v688_v59  ;;  %v77_v63 = vpack.c.b16 %v69_v56, %v69_v56  ;;  %v696_v4 = vld [vmem:[%s1111_s2 + $0x10] sm:$0xf]  ;;  %v718_v8 = vld [vmem:[%s1112_s3 + $0x8] sm:$0xf0]  ;;  %v771_v19 = vld [vmem:[%s1112_s3 + $0x14] sm:$0xf] }
  0x10   :  { %682 = vmatmul.msk.bf16.vlgmr.msra.gmra.mxu3 %vm140_vm1, %v665_v13  ;;  %654 = vmatmul.msk.bf16.vlgmr.msra.gmra.mxu1 %vm140_vm1, %v601_v14  ;;  %v724_v13 = vld [vmem:[%s1112_s3 + $0x10] sm:$0xf]  ;;  %v767_v14 = vld [vmem:[%s1111_s2 + $0x24] sm:$0xf]  ;;  %v726_v20 = vld [vmem:[%s1112_s3 + $0x18] sm:$0xf0] }
  0x11   :  { %v729_v24 = vor.u32 %v771_v19, %v726_v20  ;;  %v334_v25 = vld [vmem:[%s1111_s2 + $0x30] sm:$0xff]  ;;  %v734_v31 = vld [vmem:[%s1112_s3 + $0x28] sm:$0xf0] }
  0x12   :  { %161 = vmatpush.bf16.msra.mxu0 %v745_v15  ;;  %269 = vmatpush.bf16.msra.mxu2 %v745_v15  ;;  %v355_v26 = vunpack.c.h.b16 %v334_v25  ;;  %v442_v36 = vld [vmem:[%s1112_s3 + $0x30] sm:$0xff] }
  0x13   :  { %381 = vmatpush.bf16.msrb.mxu1 %v841_v2  ;;  %415 = vmatpush.bf16.msrb.mxu3 %v750_v7  ;;  %v462_v37 = vunpack.c.l.b16 %v442_v36  ;;  %v463_v38 = vunpack.c.h.b16 %v442_v36 }
  0x14   :  { %v363_v32 = vpack.c.b16 %v355_v26, %v355_v26 }
  0x16   :  { %162 = vmatpush.bf16.msra.mxu0 %v744_v16  ;;  %270 = vmatpush.bf16.msra.mxu2 %v744_v16 }
  0x17   :  { %382 = vmatpush.bf16.msrb.mxu1 %v747_v5 }
  0x1a   :  { %163 = vmatpush.bf16.msra.mxu0 %v743_v17  ;;  %271 = vmatpush.bf16.msra.mxu2 %v743_v17 }
  0x1b   :  { %383 = vmatpush.bf16.msrb.mxu1 %v746_v12 }
  0x1e   :  { %164 = vmatpush.bf16.msra.mxu0 %v742_v18  ;;  %272 = vmatpush.bf16.msra.mxu2 %v742_v18 }
  0x1f   :  { %384 = vmatpush.bf16.msrb.mxu1 %v745_v15 }
  0x20   :  { %683 = vmatmul.msk.bf16.gmra.mxu3 %vm140_vm1, %v673_v27  ;;  %655 = vmatmul.msk.bf16.gmra.mxu1 %vm140_vm1, %v609_v28  ;;  %v354_v27 = vunpack.c.l.b16 %v334_v25  ;;  %v732_v28 = vld [vmem:[%s1112_s3 + $0x20] sm:$0xf] }
  0x21   :  { %165 = vmatmul.bf16.vlgmr.msra.gmra.mxu0 %v597_v29  ;;  %273 = vmatmul.bf16.vlgmr.msra.gmra.mxu2 %v661_v30  ;;  %v774_v29 = vld [vmem:[%s1112_s3 + $0x24] sm:$0xf0]  ;;  %v773_v30 = vld [vmem:[%s1112_s3 + $0x24] sm:$0xf] }
  0x22   :  { %522 = vmatpush.bf16.msrb.mxu2 %v155_v6  ;;  %488 = vmatpush.bf16.msrb.mxu0 %v831_v0  ;;  %v247_v0 = vpack.c.b16 %v239_v57, %v239_v57  ;;  %v770_v6 = vld [vmem:[%s1112_s3 + $0x4] sm:$0xf0]  ;;  %v362_v33 = vpack.c.b16 %v354_v27, %v354_v27  ;;  %v733_v34 = vor.u32 %v774_v29, %v732_v28 }
  0x23   :  { %385 = vmatpush.bf16.msrb.mxu1 %v744_v16  ;;  %v717_v11 = vor.u32 %v770_v6, %v716_v1  ;;  %v737_v35 = vor.u32 %v773_v30, %v734_v31 }
  0x26   :  { %489 = vmatpush.bf16.msrb.mxu0 %v841_v2  ;;  %523 = vmatpush.bf16.msrb.mxu2 %v750_v7  ;;  %v765_v2 = vld [vmem:[%s1111_s2 + $0x14] sm:$0xf]  ;;  %v769_v7 = vld [vmem:[%s1112_s3 + $0x4] sm:$0xf] }
  0x27   :  { %386 = vmatpush.bf16.msrb.mxu1 %v743_v17  ;;  %v701_v9 = vor.u32 %v765_v2, %v698_v3 }
  0x2a   :  { %490 = vmatpush.bf16.msrb.mxu0 %v747_v5  ;;  %v766_v5 = vld [vmem:[%s1111_s2 + $0x14] sm:$0xf0] }
  0x2b   :  { %387 = vmatpush.bf16.msrb.mxu1 %v742_v18  ;;  %v697_v10 = vor.u32 %v766_v5, %v696_v4 }
  0x2e   :  { %491 = vmatpush.bf16.msrb.mxu0 %v746_v12  ;;  %v721_v12 = vor.u32 %v769_v7, %v718_v8 }
  0x30   :  { %684 = vmatmul.msk.bf16.gmra.mxu3 %vm140_vm1, %v681_v39  ;;  %656 = vmatmul.msk.bf16.gmra.mxu1 %vm140_vm1, %v617_v40  ;;  %v470_v40 = vpack.c.b16 %v462_v37, %v462_v37 }
  0x31   :  { %170 = vmatmul.bf16.gmra.mxu0 %v605_v41  ;;  %278 = vmatmul.bf16.gmra.mxu2 %v669_v42  ;;  %v471_v41 = vpack.c.b16 %v463_v38, %v463_v38 }
  0x32   :  { %492 = vmatpush.bf16.msrb.mxu0 %v745_v15  ;;  %v706_v15 = vld [vmem:[%s1111_s2 + $0x28] sm:$0xf0] }
  0x33   :  { %v709_v21 = vor.u32 %v767_v14, %v706_v15 }
  0x36   :  { %493 = vmatpush.bf16.msrb.mxu0 %v744_v16  ;;  %v704_v16 = vld [vmem:[%s1111_s2 + $0x20] sm:$0xf] }
  0x3a   :  { %494 = vmatpush.bf16.msrb.mxu0 %v743_v17  ;;  %v768_v17 = vld [vmem:[%s1111_s2 + $0x24] sm:$0xf0] }
  0x3b   :  { %v705_v22 = vor.u32 %v768_v17, %v704_v16 }
  0x3e   :  { %495 = vmatpush.bf16.msrb.mxu0 %v742_v18  ;;  %v772_v18 = vld [vmem:[%s1112_s3 + $0x14] sm:$0xf0] }
  0x3f   :  { %v725_v23 = vor.u32 %v772_v18, %v724_v13 }
  0x40   :  { %685 = vmatmul.msk.bf16.gmra.mxu3 %vm140_vm1, %v248_v51  ;;  %657 = vmatmul.msk.bf16.gmra.mxu1 %vm140_vm1, %v78_v52 }
  0x41   :  { %175 = vmatmul.bf16.gmra.mxu0 %v613_v53  ;;  %283 = vmatmul.bf16.gmra.mxu2 %v677_v54 }
  0x50   :  { %710 = vmatmul.msk.bf16.vlgmr.msrb.gmra.mxu3 %vm140_vm1, %v693_v61  ;;  %388 = vmatmul.bf16.vlgmr.msrb.gmra.mxu1 %v689_v62 }
  0x51   :  { %180 = vmatmul.bf16.gmra.mxu0 %v77_v63  ;;  %288 = vmatmul.bf16.gmra.mxu2 %v247_v0 }
  0x60   :  { %711 = vmatmul.msk.bf16.gmra.mxu3 %vm140_vm1, %v701_v9  ;;  %393 = vmatmul.bf16.gmra.mxu1 %v697_v10 }
  0x61   :  { %496 = vmatmul.bf16.vlgmr.msrb.gmra.mxu0 %v717_v11  ;;  %738 = vmatmul.msk.bf16.vlgmr.msrb.gmra.mxu2 %vm140_vm1, %v721_v12 }
  0x70   :  { %712 = vmatmul.msk.bf16.gmra.mxu3 %vm140_vm1, %v709_v21  ;;  %398 = vmatmul.bf16.gmra.mxu1 %v705_v22 }
  0x71   :  { %501 = vmatmul.bf16.gmra.mxu0 %v725_v23  ;;  %739 = vmatmul.msk.bf16.gmra.mxu2 %vm140_vm1, %v729_v24 }
  0x80   :  { %713 = vmatmul.msk.bf16.gmra.mxu3 %vm140_vm1, %v363_v32  ;;  %403 = vmatmul.bf16.gmra.mxu1 %v362_v33 }
  0x81   :  { %506 = vmatmul.bf16.gmra.mxu0 %v733_v34  ;;  %740 = vmatmul.msk.bf16.gmra.mxu2 %vm140_vm1, %v737_v35 }
  0x8d   :  { %v194_v39 = vpop.f32.mrf.mxu1 }
  0x91   :  { %511 = vmatmul.bf16.gmra.mxu0 %v470_v40  ;;  %741 = vmatmul.msk.bf16.gmra.mxu2 %vm140_vm1, %v471_v41 }
  0x93   :  { %v302_v42 = vpop.f32.mrf.mxu3 }
  0x95   :  { %v196_v43 = vpop.f32.mrf.mxu1 }
  0x9b   :  { %v304_v44 = vpop.f32.mrf.mxu3 }
  0x9d   :  { %v199_v45 = vpop.f32.mrf.mxu1 }
  0x9e   :  { %v166_v46 = vpop.f32.mrf.mxu0 }
  0x9f   :  { %v1042_v47 = vadd.f32 %v194_v39, %v166_v46 }
  0xa3   :  { %v307_v48 = vpop.f32.mrf.mxu3 }
  0xa4   :  { %v274_v49 = vpop.f32.mrf.mxu2 }
  0xa5   :  { %v303_v50 = vadd.f32 %v302_v42, %v274_v49  ;;  %v201_v51 = vpop.f32.mrf.mxu1 }
  0xa6   :  { %v168_v52 = vpop.f32.mrf.mxu0 }
  0xa7   :  { %v321_v53 = vmax.f32 %v1042_v47, %v303_v50  ;;  %v1045_v54 = vadd.f32 %v196_v43, %v168_v52  ;;  %v792_v47 = vld [vmem:[%s1113_s5] ss:$0 sm:$0xff] }
  0xab   :  { %v309_v55 = vpop.f32.mrf.mxu3 }
  0xac   :  { %v276_v56 = vpop.f32.mrf.mxu2 }
  0xad   :  { %v305_v57 = vadd.f32 %v304_v44, %v276_v56  ;;  %v204_v58 = vpop.f32.mrf.mxu1 }
  0xae   :  { %v171_v59 = vpop.f32.mrf.mxu0 }
  0xaf   :  { %v322_v60 = vmax.f32 %v1045_v54, %v305_v57  ;;  %v1048_v61 = vadd.f32 %v199_v45, %v171_v59 }
  0xb3   :  { %v312_v62 = vpop.f32.mrf.mxu3 }
  0xb4   :  { %v279_v63 = vpop.f32.mrf.mxu2 }
  0xb5   :  { %v1050_v0 = vadd.f32 %v307_v48, %v279_v63  ;;  %v206_v1 = vpop.f32.mrf.mxu1 }
  0xb6   :  { %v173_v2 = vpop.f32.mrf.mxu0 }
  0xb7   :  { %v323_v3 = vmax.f32 %v1048_v61, %v1050_v0  ;;  %v1054_v4 = vadd.f32 %v201_v51, %v173_v2 }
  0xbb   :  { %v314_v5 = vpop.f32.mrf.mxu3 }
  0xbc   :  { %v281_v6 = vpop.f32.mrf.mxu2 }
  0xbd   :  { %v1056_v7 = vadd.f32 %v309_v55, %v281_v6  ;;  %v209_v8 = vpop.f32.mrf.mxu1 }
  0xbe   :  { %v176_v9 = vpop.f32.mrf.mxu0 }
  0xbf   :  { %v324_v10 = vmax.f32 %v1054_v4, %v1056_v7  ;;  %v1060_v11 = vadd.f32 %v204_v58, %v176_v9 }
  0xc3   :  { %v317_v12 = vpop.f32.mrf.mxu3 }
  0xc4   :  { %v284_v13 = vpop.f32.mrf.mxu2 }
  0xc5   :  { %v1062_v14 = vadd.f32 %v312_v62, %v284_v13  ;;  %v211_v15 = vpop.f32.mrf.mxu1 }
  0xc6   :  { %v178_v16 = vpop.f32.mrf.mxu0 }
  0xc7   :  { %v325_v17 = vmax.f32 %v1060_v11, %v1062_v14  ;;  %v1066_v18 = vadd.f32 %v206_v1, %v178_v16 }
  0xcb   :  { %v319_v19 = vpop.f32.mrf.mxu3 }
  0xcc   :  { %v286_v20 = vpop.f32.mrf.mxu2 }
  0xcd   :  { %v1068_v21 = vadd.f32 %v314_v5, %v286_v20  ;;  %v389_v22 = vpop.f32.mrf.mxu1 }
  0xce   :  { %v181_v23 = vpop.f32.mrf.mxu0 }
  0xcf   :  { %v326_v24 = vmax.f32 %v1066_v18, %v1068_v21  ;;  %v1072_v25 = vadd.f32 %v209_v8, %v181_v23 }
  0xd3   :  { %v417_v26 = vpop.f32.mrf.mxu3 }
  0xd4   :  { %v289_v27 = vpop.f32.mrf.mxu2  ;;  %v418_v38 = vadd.f32 %v417_v26, %v389_v22 }
  0xd5   :  { %v1074_v28 = vadd.f32 %v317_v12, %v289_v27  ;;  %v391_v29 = vpop.f32.mrf.mxu1 }
  0xd6   :  { %v183_v30 = vpop.f32.mrf.mxu0 }
  0xd7   :  { %v327_v31 = vmax.f32 %v1072_v25, %v1074_v28 }
  0xdb   :  { %v419_v32 = vpop.f32.mrf.mxu3 }
  0xdc   :  { %v291_v33 = vpop.f32.mrf.mxu2  ;;  %v420_v45 = vadd.f32 %v419_v32, %v391_v29 }
  0xdd   :  { %v394_v34 = vpop.f32.mrf.mxu1 }
  0xde   :  { %v497_v35 = vpop.f32.mrf.mxu0 }
  0xe3   :  { %v422_v36 = vpop.f32.mrf.mxu3 }
  0xe4   :  { %v525_v37 = vpop.f32.mrf.mxu2  ;;  %v423_v59 = vadd.f32 %v422_v36, %v394_v34 }
  0xe5   :  { %v526_v39 = vadd.f32 %v525_v37, %v497_v35  ;;  %v396_v40 = vpop.f32.mrf.mxu1 }
  0xe6   :  { %v499_v41 = vpop.f32.mrf.mxu0 }
  0xe7   :  { %v544_v42 = vmax.f32 %v418_v38, %v526_v39 }
  0xe9   :  { %v551_v46 = vmax.f32 %v321_v53, %v544_v42 }
  0xeb   :  { %v424_v43 = vpop.f32.mrf.mxu3  ;;  %v562_v52 = vadd.f32 %v792_v47, %v551_v46 }
  0xec   :  { %v527_v44 = vpop.f32.mrf.mxu2  ;;  %v425_v9 = vadd.f32 %v424_v43, %v396_v40 }
  0xed   :  { %v528_v48 = vadd.f32 %v527_v44, %v499_v41  ;;  %v399_v49 = vpop.f32.mrf.mxu1  ;;  %v569_v58 = vmax.f32 %v562_v52, 0.0 }
  0xee   :  { %v502_v50 = vpop.f32.mrf.mxu0 }
  0xef   :  { %v545_v51 = vmax.f32 %v420_v45, %v528_v48 }
  0xf1   :  { %v552_v54 = vmax.f32 %v322_v60, %v545_v51 }
  0xf3   :  { %v563_v55 = vadd.f32 %v792_v47, %v552_v54  ;;  %v427_v56 = vpop.f32.mrf.mxu3 }
  0xf4   :  { %v530_v57 = vpop.f32.mrf.mxu2  ;;  %v428_v29 = vadd.f32 %v427_v56, %v399_v49 }
  0xf5   :  { %v570_v62 = vmax.f32 %v563_v55, 0.0  ;;  %v531_v63 = vadd.f32 %v530_v57, %v502_v50  ;;  %v401_v1 = vpop.f32.mrf.mxu1 }
  0xf6   :  { %v504_v2 = vpop.f32.mrf.mxu0 }
  0xf7   :  { %v778_v53 = vpack.c.bf16 %v570_v62, %v569_v58  ;;  %v546_v5 = vmax.f32 %v423_v59, %v531_v63 }
  0xf9   :  { %779 = vst [vmem:[%s1114_s6] sm:$0xff] %v778_v53   ;;  %v553_v60 = vmax.f32 %v323_v3, %v546_v5 }
  0xfb   :  { %v429_v6 = vpop.f32.mrf.mxu3  ;;  %v564_v19 = vadd.f32 %v792_v47, %v553_v60 }
  0xfc   :  { %v532_v8 = vpop.f32.mrf.mxu2  ;;  %v430_v36 = vadd.f32 %v429_v6, %v401_v1 }
  0xfd   :  { %v533_v12 = vadd.f32 %v532_v8, %v504_v2  ;;  %v404_v13 = vpop.f32.mrf.mxu1  ;;  %v571_v27 = vmax.f32 %v564_v19, 0.0 }
  0xfe   :  { %v507_v15 = vpop.f32.mrf.mxu0 }
  0xff   :  { %v547_v16 = vmax.f32 %v425_v9, %v533_v12 }
 0x101   :  { %v554_v20 = vmax.f32 %v324_v10, %v547_v16 }
 0x103   :  { %v565_v22 = vadd.f32 %v792_v47, %v554_v20  ;;  %v432_v23 = vpop.f32.mrf.mxu3 }
 0x104   :  { %v535_v26 = vpop.f32.mrf.mxu2  ;;  %v433_v40 = vadd.f32 %v432_v23, %v404_v13 }
 0x105   :  { %v572_v30 = vmax.f32 %v565_v22, 0.0  ;;  %v536_v32 = vadd.f32 %v535_v26, %v507_v15  ;;  %v406_v33 = vpop.f32.mrf.mxu1 }
 0x106   :  { %v509_v34 = vpop.f32.mrf.mxu0 }
 0x107   :  { %v783_v61 = vpack.c.bf16 %v572_v30, %v571_v27  ;;  %v548_v0 = vmax.f32 %v428_v29, %v536_v32 }
 0x109   :  { %790 = vst [vmem:[%s1114_s6 + $0x8] sm:$0xff] %v783_v61   ;;  %v555_v4 = vmax.f32 %v325_v17, %v548_v0 }
 0x10b   :  { %v434_v3 = vpop.f32.mrf.mxu3  ;;  %v566_v38 = vadd.f32 %v792_v47, %v555_v4 }
 0x10c   :  { %v537_v35 = vpop.f32.mrf.mxu2 }
 0x10d   :  { %v538_v7 = vadd.f32 %v537_v35, %v509_v34  ;;  %v573_v43 = vmax.f32 %v566_v38, 0.0 }
 0x10e   :  { %v512_v10 = vpop.f32.mrf.mxu0 }
 0x10f   :  { %v549_v37 = vmax.f32 %v430_v36, %v538_v7 }
 0x111   :  { %v556_v39 = vmax.f32 %v326_v24, %v549_v37 }
 0x113   :  { %v567_v41 = vadd.f32 %v792_v47, %v556_v39 }
 0x114   :  { %v540_v42 = vpop.f32.mrf.mxu2 }
 0x115   :  { %v574_v44 = vmax.f32 %v567_v41, 0.0  ;;  %v541_v45 = vadd.f32 %v540_v42, %v512_v10 }
 0x116   :  { %v514_v46 = vpop.f32.mrf.mxu0 }
 0x117   :  { %v788_v48 = vpack.c.bf16 %v574_v44, %v573_v43  ;;  %v550_v49 = vmax.f32 %v433_v40, %v541_v45 }
 0x119   :  { %791 = vst [vmem:[%s1114_s6 + $0x10] sm:$0xff] %v788_v48   ;;  %v557_v11 = vmax.f32 %v327_v31, %v550_v49 }
 0x11b   :  { %v568_v14 = vadd.f32 %v792_v47, %v557_v11 }
 0x11c   :  { %v542_v17 = vpop.f32.mrf.mxu2 }
 0x11d   :  { %v575_v18 = vmax.f32 %v568_v14, 0.0 }
 0x11f   :  { %v582_v21 = vpack.c.bf16 %v575_v18, %v575_v18 }
 0x121   :  { %589 = vst [vmem:[%s1114_s6 + $0x18] sm:$0xf] %v582_v21 }

</bundles_post_ra>
